<compile_context>
chip_gen: v7x
topology: tpu7x:2x2x1
jax: 0.10.0
libtpu: 0.0.40
codegen_flags: <defaults>
</compile_context>

<pallas_src>
import functools

import jax
import jax.numpy as jnp
from jax.experimental import pallas as pl
from jax.experimental.pallas import tpu as pltpu

_LANE = 128
_SUBLANE = 8


def _round_up(n, m):
    return ((n + m - 1) // m) * m


def _cdiv(a, b):
    return (a + b - 1) // b


def _vmem_capacity_bytes():
    try:
        return int(pltpu.get_tpu_info().vmem_capacity_bytes)
    except Exception:
        return 64 << 20  # conservative: v7x per-TensorCore VMEM


def _apply_act(y, act, slope):
    # y is float32; all activation math stays f32 (safe on v5e's f32-only VPU/EUP).
    if act == "lrelu":
        return jnp.where(y >= 0, y, slope * y)
    elif act == "xtanh":
        return jnp.tanh(y) + slope * y
    elif act == "sigmoid":
        return jax.nn.sigmoid(y)
    elif act == "none":
        return y
    else:
        raise ValueError(f"Incorrect activation: {act}")


def _fused_mlp_kernel(*refs, acts, slope, f32_precision):
    # refs = (x_ref, w0, b0, w1, b1, ..., o_ref); all tiles already in VMEM.
    x_ref, o_ref = refs[0], refs[-1]
    wb = refs[1:-1]
    n_layers = len(wb) // 2

    h = x_ref[...]  # running activation; stays in vregs/VMEM across all layers
    for c in range(n_layers):
        w = wb[2 * c][...]        # (din_p, dout_p), compute dtype (bf16 or f32)
        b = wb[2 * c + 1][...]    # (1, dout_p), f32
        prec = f32_precision if w.dtype == jnp.float32 else None
        # MXU matmul: operands in compute dtype, f32 accumulation.
        y = jnp.dot(h.astype(w.dtype), w,
                    preferred_element_type=jnp.float32, precision=prec)
        y = y + b                 # f32 bias add (implicit broadcast)
        if c < n_layers - 1:
            h = _apply_act(y, acts[c], slope)
        else:
            h = y                 # final layer: no activation
    o_ref[...] = h.astype(o_ref.dtype)  # single lane-dense store


class MLPPallas:
    """Mirror of the PyTorch MLP module; forward pass is one fused Pallas kernel."""

    def __init__(self, input_dim, output_dim, hidden_dim, n_layers,
                 activation="none", slope=0.1, compute_dtype=jnp.bfloat16,
                 batch_tile=512, key=None):
        self.input_dim = input_dim
        self.output_dim = output_dim
        self.n_layers = n_layers
        self.slope = slope
        self.compute_dtype = compute_dtype
        self.batch_tile = batch_tile

        if isinstance(hidden_dim, (int, float)):
            self.hidden_dim = [int(hidden_dim)] * (n_layers - 1)
        elif isinstance(hidden_dim, list):
            self.hidden_dim = hidden_dim
        else:
            raise ValueError(f"Wrong argument type for hidden_dim {hidden_dim}")

        if isinstance(activation, str):
            self.activation = [activation] * (n_layers - 1)
        elif isinstance(activation, list):
            self.activation = activation
        else:
            raise ValueError(f"Wrong argument type for activation {activation}")

        # Layer dims, matching nn.Linear construction in the module.
        if n_layers == 1:
            dims = [(input_dim, output_dim)]
        else:
            dims = [(input_dim, self.hidden_dim[0])]
            for i in range(1, n_layers - 1):
                dims.append((self.hidden_dim[i - 1], self.hidden_dim[i]))
            dims.append((self.hidden_dim[n_layers - 2], output_dim))
        self.dims = dims

        # Deterministic init (uniform +-1/sqrt(fan_in), like PyTorch Linear).
        if key is None:
            key = jax.random.PRNGKey(0)
        self.weights = []    # unpadded f32 (used by the pure-JAX reference)
        self.biases = []
        self.weights_p = []  # lane-padded, compute dtype (kernel operands)
        self.biases_p = []   # lane-padded, f32 (bias/activation math stays f32)
        for (din, dout) in dims:
            key, kw, kb = jax.random.split(key, 3)
            bound = 1.0 / jnp.sqrt(jnp.float32(din))
            w = jax.random.uniform(kw, (din, dout), jnp.float32, -bound, bound)
            b = jax.random.uniform(kb, (1, dout), jnp.float32, -bound, bound)
            self.weights.append(w)
            self.biases.append(b)

            din_p = _round_up(din, _LANE)
            dout_p = _round_up(dout, _LANE)
            w_p = jnp.zeros((din_p, dout_p), jnp.float32).at[:din, :dout].set(w)
            b_p = jnp.zeros((1, dout_p), jnp.float32).at[:, :dout].set(b)
            self.weights_p.append(w_p.astype(compute_dtype))
            self.biases_p.append(b_p)

        self.in_pad = _round_up(input_dim, _LANE)
        self.out_pad = _round_up(output_dim, _LANE)
        self.max_feat_pad = max(
            [self.in_pad, self.out_pad]
            + [_round_up(d, _LANE) for d in self.dims[-1]]
            + [_round_up(d, _LANE) for pair in self.dims for d in pair])
        self._vmem_cap = _vmem_capacity_bytes()

    # ------------------------------------------------------------------ call
    def __call__(self, x):
        B, Din = x.shape
        assert Din == self.input_dim

        cdt = jnp.dtype(self.compute_dtype)
        out_dtype = x.dtype
        # bf16 packs 16 rows per vreg; f32 packs 8 — keep tiles vreg-full.
        min_sub = max(_SUBLANE, 32 // cdt.itemsize)

        # Batch tiling.
        if B <= 128:
            # Tiny batch: single grid step (launch/DMA-latency bound).
            tm = _round_up(B, min_sub)
        elif B <= 2 * self.batch_tile:
            # Moderate batch: guarantee >= 2 "parallel" grid steps so both v7x
            # TensorCores get work.
            tm = _round_up(_cdiv(B, 2), _LANE)
        else:
            # Large batch: 512-row (256-aligned) tiles for the v6e/v7x MXU.
            # TODO(synk): cap tm at 128 on v5e (1 vst slot, smaller MXU).
            tm = self.batch_tile
        B_pad = _round_up(B, tm)
        n_blocks = B_pad // tm

        # Host-side cast + zero-pad to a lane-dense slab (halves DMA for bf16).
        x_p = jnp.zeros((B_pad, self.in_pad), cdt).at[:B, :Din].set(x.astype(cdt))

        # ---------------- VMEM budget (single-buffered weights + 2x I/O tiles)
        weight_bytes = sum(w.size * w.dtype.itemsize + b.size * b.dtype.itemsize
                           for w, b in zip(self.weights_p, self.biases_p))
        io_bytes = (2 * tm * self.in_pad * cdt.itemsize
                    + 2 * tm * self.out_pad * jnp.dtype(out_dtype).itemsize)
        act_bytes = 3 * tm * self.max_feat_pad * 4  # f32 h + matmul result + slack
        needed = weight_bytes + io_bytes + act_bytes
        if needed + (8 << 20) > self._vmem_cap:
            # TODO(synk): add an N-tiled (output-feature) path via
            # pltpu.emit_pipeline for layers whose padded weight exceeds the
            # per-generation budget; the fully-fused weight-resident scheme
            # targets small/medium MLPs only.
            raise ValueError(
                f"Fused MLP needs ~{needed >> 20} MiB VMEM but only "
                f"{self._vmem_cap >> 20} MiB is available; reduce hidden_dim, "
                f"use a narrower compute_dtype, or add N-tiling.")
        vmem_limit = int(min(max(2 * needed + (8 << 20), 32 << 20), self._vmem_cap))

        # ---------------- advisory cost estimate
        flops = 0
        transcendentals = 0
        bytes_accessed = x_p.size * x_p.dtype.itemsize
        for c, (w, b) in enumerate(zip(self.weights_p, self.biases_p)):
            flops += 2 * B_pad * w.shape[0] * w.shape[1]
            bytes_accessed += w.size * w.dtype.itemsize + b.size * b.dtype.itemsize
            if c < self.n_layers - 1 and self.activation[c] in ("xtanh", "sigmoid"):
                transcendentals += B_pad * w.shape[1]
        bytes_accessed += B_pad * self.out_pad * jnp.dtype(out_dtype).itemsize
        cost = pl.CostEstimate(flops=flops, transcendentals=transcendentals,
                               bytes_accessed=bytes_accessed)

        operands = [x_p]
        for w, b in zip(self.weights_p, self.biases_p):
            operands += [w, b]

        # Preferred config: single-buffered weights + HIGHEST-precision f32 MXU.
        # Fall back to the previously-verified config if jax/Mosaic rejects it.
        try:
            y_p = self._run(operands, tm, n_blocks, B_pad, out_dtype,
                            vmem_limit, cost, aggressive=True)
        except Exception:
            y_p = self._run(operands, tm, n_blocks, B_pad, out_dtype,
                            vmem_limit, cost, aggressive=False)

        # Strip batch/lane padding.
        return y_p[:B, :self.output_dim]

    # ------------------------------------------------------------------ impl
    def _run(self, operands, tm, n_blocks, B_pad, out_dtype, vmem_limit, cost,
             aggressive):
        def const_spec(shape):
            idx = lambda i: (0, 0)
            if aggressive:
                # Grid-invariant operand: single-buffer it (halves its VMEM share;
                # the default 2-deep pipeline buys nothing for a constant block).
                return pl.BlockSpec(shape, idx, pipeline_mode=pl.Buffered(1))
            return pl.BlockSpec(shape, idx)

        in_specs = [pl.BlockSpec((tm, self.in_pad), lambda i: (i, 0))]
        for w, b in zip(self.weights_p, self.biases_p):
            in_specs.append(const_spec(w.shape))
            in_specs.append(const_spec(b.shape))
        out_specs = pl.BlockSpec((tm, self.out_pad), lambda i: (i, 0))

        kernel = functools.partial(
            _fused_mlp_kernel,
            acts=tuple(self.activation),
            slope=self.slope,
            f32_precision=(jax.lax.Precision.HIGHEST if aggressive else None),
        )

        call = pl.pallas_call(
            kernel,
            out_shape=jax.ShapeDtypeStruct((B_pad, self.out_pad), out_dtype),
            grid=(n_blocks,),
            in_specs=in_specs,
            out_specs=out_specs,
            compiler_params=pltpu.CompilerParams(
                dimension_semantics=("parallel",),
                vmem_limit_bytes=vmem_limit),
            cost_estimate=cost,
        )
        # Block here so any compile/runtime failure of the aggressive config is
        # caught by the caller's fallback.
        return jax.block_until_ready(call(*operands))

    # ------------------------------------------------------------- reference
    def reference(self, x):
        """Pure-JAX f32 reference for verification."""
        h = x
        for c in range(self.n_layers):
            y = h @ self.weights[c] + self.biases[c]
            if c == self.n_layers - 1:
                h = y
            else:
                h = _apply_act(y, self.activation[c], self.slope)
        return h


if __name__ == "__main__":
    key = jax.random.PRNGKey(0)
    kx, kb2, kp = jax.random.split(key, 3)

    batch, input_dim, hidden_dim, output_dim, n_layers = 8, 16, 32, 8, 3
    x = jax.random.normal(kx, (batch, input_dim), jnp.float32)

    # 1) f32 MXU path (precision=HIGHEST): tight match vs pure-JAX f32 reference.
    mlp_f32 = MLPPallas(input_dim, output_dim, hidden_dim, n_layers,
                        activation="lrelu", slope=0.1,
                        compute_dtype=jnp.float32, key=kp)
    out = jax.block_until_ready(mlp_f32(x))
    ref = mlp_f32.reference(x)
    assert out.shape == (batch, output_dim)
    assert jnp.allclose(out, ref, atol=1e-5, rtol=1e-5), "f32 mismatch vs reference"

    # 2) Default bf16 MXU operands / f32 accumulation (weight-byte-bound regime).
    mlp_bf16 = MLPPallas(input_dim, output_dim, hidden_dim, n_layers,
                         activation="xtanh", slope=0.1, key=kp)
    out16 = jax.block_until_ready(mlp_bf16(x))
    ref16 = mlp_bf16.reference(x)
    assert out16.shape == (batch, output_dim)
    assert jnp.allclose(out16, ref16, atol=5e-2, rtol=5e-2), "bf16 mismatch vs reference"

    # 3) Moderate batch: exercises the >=2-block "parallel" grid (megacore) path
    #    and the sigmoid padded-lane invariant.
    xb = jax.random.normal(kb2, (384, input_dim), jnp.float32)
    mlp_mb = MLPPallas(input_dim, output_dim, hidden_dim, n_layers,
                       activation="sigmoid", slope=0.1, key=kp)
    outb = jax.block_until_ready(mlp_mb(xb))
    refb = mlp_mb.reference(xb)
    assert outb.shape == (384, output_dim)
    assert jnp.allclose(outb, refb, atol=5e-2, rtol=5e-2), "multi-block mismatch vs reference"

    print("KERNEL_OK")
</pallas_src>

<mosaic_0001>
module attributes {stable_mosaic.version = 11 : i64} {
  func.func @_fused_mlp_kernel(%arg0: i32, %arg1: memref<8x128xf32, #tpu.memory_space<vmem>>, %arg2: memref<128x128xf32, #tpu.memory_space<vmem>>, %arg3: memref<1x128xf32, #tpu.memory_space<vmem>>, %arg4: memref<128x128xf32, #tpu.memory_space<vmem>>, %arg5: memref<1x128xf32, #tpu.memory_space<vmem>>, %arg6: memref<128x128xf32, #tpu.memory_space<vmem>>, %arg7: memref<1x128xf32, #tpu.memory_space<vmem>>, %arg8: memref<8x128xf32, #tpu.memory_space<vmem>>) attributes {dimension_semantics = [#tpu.dimension_semantics<parallel>], iteration_bounds = array<i64: 1>, scalar_prefetch = 0 : i64, scratch_operands = 0 : i64, tpu.core_type = #tpu.core_type<tc>, window_params = [{transform_indices = @transform_0, window_bounds = array<i64: 8, 128>}, {pipeline_mode = #tpu.pipeline_mode<synchronous>, transform_indices = @transform_1, window_bounds = array<i64: 128, 128>}, {pipeline_mode = #tpu.pipeline_mode<synchronous>, transform_indices = @transform_2, window_bounds = array<i64: 1, 128>}, {pipeline_mode = #tpu.pipeline_mode<synchronous>, transform_indices = @transform_3, window_bounds = array<i64: 128, 128>}, {pipeline_mode = #tpu.pipeline_mode<synchronous>, transform_indices = @transform_4, window_bounds = array<i64: 1, 128>}, {pipeline_mode = #tpu.pipeline_mode<synchronous>, transform_indices = @transform_5, window_bounds = array<i64: 128, 128>}, {pipeline_mode = #tpu.pipeline_mode<synchronous>, transform_indices = @transform_6, window_bounds = array<i64: 1, 128>}, {transform_indices = @transform_7, window_bounds = array<i64: 8, 128>}]} {
    %c0 = arith.constant 0 : index
    %c0_0 = arith.constant 0 : index
    %0 = vector.load %arg1[%c0, %c0_0] : memref<8x128xf32, #tpu.memory_space<vmem>>, vector<8x128xf32>
    %c0_1 = arith.constant 0 : index
    %c0_2 = arith.constant 0 : index
    %1 = vector.load %arg2[%c0_1, %c0_2] : memref<128x128xf32, #tpu.memory_space<vmem>>, vector<128x128xf32>
    %c0_3 = arith.constant 0 : index
    %c0_4 = arith.constant 0 : index
    %2 = vector.load %arg3[%c0_3, %c0_4] : memref<1x128xf32, #tpu.memory_space<vmem>>, vector<1x128xf32>
    %cst = arith.constant dense<0.000000e+00> : vector<8x128xf32>
    %3 = tpu.matmul %0, %1, %cst {dimension_numbers = #tpu.dot_dimension_numbers<[1], [0], [0], [1], [0, 0, 1, 1], [], []>, precision = #tpu.contract_precision<fp32>} : vector<8x128xf32>, vector<128x128xf32>, vector<8x128xf32> -> vector<8x128xf32>
    %4 = vector.broadcast %2 : vector<1x128xf32> to vector<8x128xf32>
    %5 = arith.addf %3, %4 : vector<8x128xf32>
    %cst_5 = arith.constant 0.000000e+00 : f32
    %6 = vector.broadcast %cst_5 : f32 to vector<8x128xf32>
    %7 = arith.cmpf oge, %5, %6 : vector<8x128xf32>
    %cst_6 = arith.constant 1.000000e-01 : f32
    %8 = vector.broadcast %cst_6 : f32 to vector<8x128xf32>
    %9 = arith.mulf %8, %5 : vector<8x128xf32>
    %10 = arith.select %7, %5, %9 : vector<8x128xi1>, vector<8x128xf32>
    %c0_7 = arith.constant 0 : index
    %c0_8 = arith.constant 0 : index
    %11 = vector.load %arg4[%c0_7, %c0_8] : memref<128x128xf32, #tpu.memory_space<vmem>>, vector<128x128xf32>
    %c0_9 = arith.constant 0 : index
    %c0_10 = arith.constant 0 : index
    %12 = vector.load %arg5[%c0_9, %c0_10] : memref<1x128xf32, #tpu.memory_space<vmem>>, vector<1x128xf32>
    %cst_11 = arith.constant dense<0.000000e+00> : vector<8x128xf32>
    %13 = tpu.matmul %10, %11, %cst_11 {dimension_numbers = #tpu.dot_dimension_numbers<[1], [0], [0], [1], [0, 0, 1, 1], [], []>, precision = #tpu.contract_precision<fp32>} : vector<8x128xf32>, vector<128x128xf32>, vector<8x128xf32> -> vector<8x128xf32>
    %14 = vector.broadcast %12 : vector<1x128xf32> to vector<8x128xf32>
    %15 = arith.addf %13, %14 : vector<8x128xf32>
    %cst_12 = arith.constant 0.000000e+00 : f32
    %16 = vector.broadcast %cst_12 : f32 to vector<8x128xf32>
    %17 = arith.cmpf oge, %15, %16 : vector<8x128xf32>
    %cst_13 = arith.constant 1.000000e-01 : f32
    %18 = vector.broadcast %cst_13 : f32 to vector<8x128xf32>
    %19 = arith.mulf %18, %15 : vector<8x128xf32>
    %20 = arith.select %17, %15, %19 : vector<8x128xi1>, vector<8x128xf32>
    %c0_14 = arith.constant 0 : index
    %c0_15 = arith.constant 0 : index
    %21 = vector.load %arg6[%c0_14, %c0_15] : memref<128x128xf32, #tpu.memory_space<vmem>>, vector<128x128xf32>
    %c0_16 = arith.constant 0 : index
    %c0_17 = arith.constant 0 : index
    %22 = vector.load %arg7[%c0_16, %c0_17] : memref<1x128xf32, #tpu.memory_space<vmem>>, vector<1x128xf32>
    %cst_18 = arith.constant dense<0.000000e+00> : vector<8x128xf32>
    %23 = tpu.matmul %20, %21, %cst_18 {dimension_numbers = #tpu.dot_dimension_numbers<[1], [0], [0], [1], [0, 0, 1, 1], [], []>, precision = #tpu.contract_precision<fp32>} : vector<8x128xf32>, vector<128x128xf32>, vector<8x128xf32> -> vector<8x128xf32>
    %24 = vector.broadcast %22 : vector<1x128xf32> to vector<8x128xf32>
    %25 = arith.addf %23, %24 : vector<8x128xf32>
    %c0_19 = arith.constant 0 : index
    %c0_20 = arith.constant 0 : index
    %26 = vector.load %arg8[%c0_19, %c0_20] : memref<8x128xf32, #tpu.memory_space<vmem>>, vector<8x128xf32>
    tpu.vector_store %arg8[%c0_19, %c0_20], %25 {strides = array<i32>} : memref<8x128xf32, #tpu.memory_space<vmem>>, vector<8x128xf32>,
    return
  }
  func.func @transform_0(%arg0: i32) -> (i32, i32) {
    %c0_i32 = arith.constant 0 : i32
    %c0_i32_0 = arith.constant 0 : i32
    return %arg0, %c0_i32 : i32, i32
  }
  func.func @transform_1(%arg0: i32) -> (i32, i32) {
    %c0_i32 = arith.constant 0 : i32
    %c0_i32_0 = arith.constant 0 : i32
    %c0_i32_1 = arith.constant 0 : i32
    return %c0_i32, %c0_i32_0 : i32, i32
  }
  func.func @transform_2(%arg0: i32) -> (i32, i32) {
    %c0_i32 = arith.constant 0 : i32
    %c0_i32_0 = arith.constant 0 : i32
    %c0_i32_1 = arith.constant 0 : i32
    return %c0_i32, %c0_i32_0 : i32, i32
  }
  func.func @transform_3(%arg0: i32) -> (i32, i32) {
    %c0_i32 = arith.constant 0 : i32
    %c0_i32_0 = arith.constant 0 : i32
    %c0_i32_1 = arith.constant 0 : i32
    return %c0_i32, %c0_i32_0 : i32, i32
  }
  func.func @transform_4(%arg0: i32) -> (i32, i32) {
    %c0_i32 = arith.constant 0 : i32
    %c0_i32_0 = arith.constant 0 : i32
    %c0_i32_1 = arith.constant 0 : i32
    return %c0_i32, %c0_i32_0 : i32, i32
  }
  func.func @transform_5(%arg0: i32) -> (i32, i32) {
    %c0_i32 = arith.constant 0 : i32
    %c0_i32_0 = arith.constant 0 : i32
    %c0_i32_1 = arith.constant 0 : i32
    return %c0_i32, %c0_i32_0 : i32, i32
  }
  func.func @transform_6(%arg0: i32) -> (i32, i32) {
    %c0_i32 = arith.constant 0 : i32
    %c0_i32_0 = arith.constant 0 : i32
    %c0_i32_1 = arith.constant 0 : i32
    return %c0_i32, %c0_i32_0 : i32, i32
  }
  func.func @transform_7(%arg0: i32) -> (i32, i32) {
    %c0_i32 = arith.constant 0 : i32
    %c0_i32_0 = arith.constant 0 : i32
    return %arg0, %c0_i32 : i32, i32
  }
}

module attributes {stable_mosaic.version = 11 : i64} {
  func.func @_fused_mlp_kernel(%arg0: i32, %arg1: memref<8x128xf32, #tpu.memory_space<vmem>>, %arg2: memref<128x128xf32, #tpu.memory_space<vmem>>, %arg3: memref<1x128xf32, #tpu.memory_space<vmem>>, %arg4: memref<128x128xf32, #tpu.memory_space<vmem>>, %arg5: memref<1x128xf32, #tpu.memory_space<vmem>>, %arg6: memref<128x128xf32, #tpu.memory_space<vmem>>, %arg7: memref<1x128xf32, #tpu.memory_space<vmem>>, %arg8: memref<8x128xf32, #tpu.memory_space<vmem>>) attributes {dimension_semantics = [#tpu.dimension_semantics<parallel>], iteration_bounds = array<i64: 1>, scalar_prefetch = 0 : i64, scratch_operands = 0 : i64, tpu.core_type = #tpu.core_type<tc>, window_params = [{transform_indices = @transform_0, window_bounds = array<i64: 8, 128>}, {pipeline_mode = #tpu.pipeline_mode<synchronous>, transform_indices = @transform_1, window_bounds = array<i64: 128, 128>}, {pipeline_mode = #tpu.pipeline_mode<synchronous>, transform_indices = @transform_2, window_bounds = array<i64: 1, 128>}, {pipeline_mode = #tpu.pipeline_mode<synchronous>, transform_indices = @transform_3, window_bounds = array<i64: 128, 128>}, {pipeline_mode = #tpu.pipeline_mode<synchronous>, transform_indices = @transform_4, window_bounds = array<i64: 1, 128>}, {pipeline_mode = #tpu.pipeline_mode<synchronous>, transform_indices = @transform_5, window_bounds = array<i64: 128, 128>}, {pipeline_mode = #tpu.pipeline_mode<synchronous>, transform_indices = @transform_6, window_bounds = array<i64: 1, 128>}, {transform_indices = @transform_7, window_bounds = array<i64: 8, 128>}]} {
    %c0 = arith.constant 0 : index
    %c0_0 = arith.constant 0 : index
    %0 = vector.load %arg1[%c0, %c0_0] : memref<8x128xf32, #tpu.memory_space<vmem>>, vector<8x128xf32>
    %c0_1 = arith.constant 0 : index
    %c0_2 = arith.constant 0 : index
    %1 = vector.load %arg2[%c0_1, %c0_2] : memref<128x128xf32, #tpu.memory_space<vmem>>, vector<128x128xf32>
    %c0_3 = arith.constant 0 : index
    %c0_4 = arith.constant 0 : index
    %2 = vector.load %arg3[%c0_3, %c0_4] : memref<1x128xf32, #tpu.memory_space<vmem>>, vector<1x128xf32>
    %cst = arith.constant dense<0.000000e+00> : vector<8x128xf32>
    %3 = tpu.matmul %0, %1, %cst {dimension_numbers = #tpu.dot_dimension_numbers<[1], [0], [0], [1], [0, 0, 1, 1], [], []>} : vector<8x128xf32>, vector<128x128xf32>, vector<8x128xf32> -> vector<8x128xf32>
    %4 = vector.broadcast %2 : vector<1x128xf32> to vector<8x128xf32>
    %5 = arith.addf %3, %4 : vector<8x128xf32>
    %cst_5 = arith.constant 0.000000e+00 : f32
    %6 = vector.broadcast %cst_5 : f32 to vector<8x128xf32>
    %7 = arith.cmpf oge, %5, %6 : vector<8x128xf32>
    %cst_6 = arith.constant 1.000000e-01 : f32
    %8 = vector.broadcast %cst_6 : f32 to vector<8x128xf32>
    %9 = arith.mulf %8, %5 : vector<8x128xf32>
    %10 = arith.select %7, %5, %9 : vector<8x128xi1>, vector<8x128xf32>
    %c0_7 = arith.constant 0 : index
    %c0_8 = arith.constant 0 : index
    %11 = vector.load %arg4[%c0_7, %c0_8] : memref<128x128xf32, #tpu.memory_space<vmem>>, vector<128x128xf32>
    %c0_9 = arith.constant 0 : index
    %c0_10 = arith.constant 0 : index
    %12 = vector.load %arg5[%c0_9, %c0_10] : memref<1x128xf32, #tpu.memory_space<vmem>>, vector<1x128xf32>
    %cst_11 = arith.constant dense<0.000000e+00> : vector<8x128xf32>
    %13 = tpu.matmul %10, %11, %cst_11 {dimension_numbers = #tpu.dot_dimension_numbers<[1], [0], [0], [1], [0, 0, 1, 1], [], []>} : vector<8x128xf32>, vector<128x128xf32>, vector<8x128xf32> -> vector<8x128xf32>
    %14 = vector.broadcast %12 : vector<1x128xf32> to vector<8x128xf32>
    %15 = arith.addf %13, %14 : vector<8x128xf32>
    %cst_12 = arith.constant 0.000000e+00 : f32
    %16 = vector.broadcast %cst_12 : f32 to vector<8x128xf32>
    %17 = arith.cmpf oge, %15, %16 : vector<8x128xf32>
    %cst_13 = arith.constant 1.000000e-01 : f32
    %18 = vector.broadcast %cst_13 : f32 to vector<8x128xf32>
    %19 = arith.mulf %18, %15 : vector<8x128xf32>
    %20 = arith.select %17, %15, %19 : vector<8x128xi1>, vector<8x128xf32>
    %c0_14 = arith.constant 0 : index
    %c0_15 = arith.constant 0 : index
    %21 = vector.load %arg6[%c0_14, %c0_15] : memref<128x128xf32, #tpu.memory_space<vmem>>, vector<128x128xf32>
    %c0_16 = arith.constant 0 : index
    %c0_17 = arith.constant 0 : index
    %22 = vector.load %arg7[%c0_16, %c0_17] : memref<1x128xf32, #tpu.memory_space<vmem>>, vector<1x128xf32>
    %cst_18 = arith.constant dense<0.000000e+00> : vector<8x128xf32>
    %23 = tpu.matmul %20, %21, %cst_18 {dimension_numbers = #tpu.dot_dimension_numbers<[1], [0], [0], [1], [0, 0, 1, 1], [], []>} : vector<8x128xf32>, vector<128x128xf32>, vector<8x128xf32> -> vector<8x128xf32>
    %24 = vector.broadcast %22 : vector<1x128xf32> to vector<8x128xf32>
    %25 = arith.addf %23, %24 : vector<8x128xf32>
    %c0_19 = arith.constant 0 : index
    %c0_20 = arith.constant 0 : index
    %26 = vector.load %arg8[%c0_19, %c0_20] : memref<8x128xf32, #tpu.memory_space<vmem>>, vector<8x128xf32>
    tpu.vector_store %arg8[%c0_19, %c0_20], %25 {strides = array<i32>} : memref<8x128xf32, #tpu.memory_space<vmem>>, vector<8x128xf32>,
    return
  }
  func.func @transform_0(%arg0: i32) -> (i32, i32) {
    %c0_i32 = arith.constant 0 : i32
    %c0_i32_0 = arith.constant 0 : i32
    return %arg0, %c0_i32 : i32, i32
  }
  func.func @transform_1(%arg0: i32) -> (i32, i32) {
    %c0_i32 = arith.constant 0 : i32
    %c0_i32_0 = arith.constant 0 : i32
    %c0_i32_1 = arith.constant 0 : i32
    return %c0_i32, %c0_i32_0 : i32, i32
  }
  func.func @transform_2(%arg0: i32) -> (i32, i32) {
    %c0_i32 = arith.constant 0 : i32
    %c0_i32_0 = arith.constant 0 : i32
    %c0_i32_1 = arith.constant 0 : i32
    return %c0_i32, %c0_i32_0 : i32, i32
  }
  func.func @transform_3(%arg0: i32) -> (i32, i32) {
    %c0_i32 = arith.constant 0 : i32
    %c0_i32_0 = arith.constant 0 : i32
    %c0_i32_1 = arith.constant 0 : i32
    return %c0_i32, %c0_i32_0 : i32, i32
  }
  func.func @transform_4(%arg0: i32) -> (i32, i32) {
    %c0_i32 = arith.constant 0 : i32
    %c0_i32_0 = arith.constant 0 : i32
    %c0_i32_1 = arith.constant 0 : i32
    return %c0_i32, %c0_i32_0 : i32, i32
  }
  func.func @transform_5(%arg0: i32) -> (i32, i32) {
    %c0_i32 = arith.constant 0 : i32
    %c0_i32_0 = arith.constant 0 : i32
    %c0_i32_1 = arith.constant 0 : i32
    return %c0_i32, %c0_i32_0 : i32, i32
  }
  func.func @transform_6(%arg0: i32) -> (i32, i32) {
    %c0_i32 = arith.constant 0 : i32
    %c0_i32_0 = arith.constant 0 : i32
    %c0_i32_1 = arith.constant 0 : i32
    return %c0_i32, %c0_i32_0 : i32, i32
  }
  func.func @transform_7(%arg0: i32) -> (i32, i32) {
    %c0_i32 = arith.constant 0 : i32
    %c0_i32_0 = arith.constant 0 : i32
    return %arg0, %c0_i32 : i32, i32
  }
}

</mosaic_0001>

<bundles_post_ra>
// kernel: tpu_custom_call.1
= control target key start
LH: loop header
LB: loop body
LE: loop exit
PB: predicated region body
PF: predicated region fallthrough
CT: control target
= control target key end

     0   :  { %12 = vsyncpa [#allocation3], 0  ;;  %s4632_s0 = inlined_call_operand.hbm [shape: f32[8,128], index: 0, kind: input, shape index: {}]   ;;  %s4633_s1 = inlined_call_operand.hbm [shape: f32[128,128], index: 1, kind: input, shape index: {}]   ;;  %s4634_s2 = inlined_call_operand.vmem [shape: f32[1,128], index: 2, kind: input, shape index: {}]   ;;  %s4635_s3 = inlined_call_operand.hbm [shape: f32[128,128], index: 3, kind: input, shape index: {}]   ;;  %s4636_s4 = inlined_call_operand.vmem [shape: f32[1,128], index: 4, kind: input, shape index: {}]   ;;  %s4637_s5 = inlined_call_operand.hbm [shape: f32[128,128], index: 5, kind: input, shape index: {}]   ;;  %s4638_s6 = inlined_call_operand.vmem [shape: f32[1,128], index: 6, kind: input, shape index: {}]   ;;  %s4639_s7 = inlined_call_operand.hbm [shape: f32[8,128], index: 7, kind: output, shape index: {}]  }
   0x1   :  { %13 = vsyncpa [#allocation6], 0 }
   0x2   :  { %14 = vsyncpa [#allocation9], 0 }
   0x3   :  { %15 = vsyncpa [#allocation4], 0  ;;  %s3628_s24 = smov [#allocation5]   ;;  %s3510_s28 = scalar_lea.hbm %s4633_s1, 2048 }
   0x4   :  { %s31_s25 = sshll.u32 %s3628_s24, 4  ;;  %p3511_p0 = scmp.ne.s32.totalorder %s4633_s1, %s3510_s28  ;;  %s32_s25 = int_to_ptr.vmem [resolvable:$true] %s31_s25 }
   0x5   :  { %p3514_p1 = scmp.lt.u32.totalorder %s3510_s28, %s4633_s1 }
   0x7   :  { %p3516_p2 = pnand %p3514_p1, %p3511_p0 }
   0x9   :  { %3519 = shalt.err (!%p3516_p2)
}
   0xa   :  { %s3520_s10 = scalar_lea.vmem %s32_s25, 2048  ;;  %p3525_p4 = scmp.lt.s32.totalorder %s32_s25, %s32_s25 }
   0xb   :  { %p3521_p3 = scmp.ne.s32.totalorder %s32_s25, %s3520_s10  ;;  %p3526_p5 = scmp.lt.s32.totalorder %s3520_s10, %s3520_s10 }
   0xd   :  { %p3527_p6 = por %p3526_p5, %p3525_p4 }
   0xf   :  { %p3528_p7 = pnand %p3527_p6, %p3521_p3 }
  0x11   :  { %3531 = shalt.err (!%p3528_p7)
}
  0x12   :  { %s3629_s11 = smov 128   ;;  %s3630_s12 = smov 8  }
  0x13   :  { %37 = dma.hbm_to_vmem [thread:$0]  %s4633_s1, 2048, %s32_s25, [#allocation6], %s3629_s11, %s3629_s11, %s3630_s12  }
  0x14   :  { %s3631_s15 = smov [#allocation2]   ;;  %s3632_s17 = smov [#allocation7]  }
  0x15   :  { %s22_s16 = sshll.u32 %s3631_s15, 4  ;;  %s45_s18 = sshll.u32 %s3632_s17, 4  ;;  %s23_s16 = int_to_ptr.vmem [resolvable:$true] %s22_s16  ;;  %s46_s18 = int_to_ptr.vmem [resolvable:$true] %s45_s18 }
  0x16   :  { %s3532_s21 = scalar_lea.hbm %s4632_s0, 128 }
  0x17   :  { %p3533_p8 = scmp.ne.s32.totalorder %s4632_s0, %s3532_s21  ;;  %p3536_p9 = scmp.lt.u32.totalorder %s3532_s21, %s4632_s0 }
  0x19   :  { %p3538_p10 = pnand %p3536_p9, %p3533_p8 }
  0x1b   :  { %3541 = shalt.err (!%p3538_p10)
}
  0x1c   :  { %s3542_s1 = scalar_lea.vmem %s23_s16, 128  ;;  %p3547_p12 = scmp.lt.s32.totalorder %s23_s16, %s23_s16 }
  0x1d   :  { %p3543_p11 = scmp.ne.s32.totalorder %s23_s16, %s3542_s1  ;;  %p3548_p13 = scmp.lt.s32.totalorder %s3542_s1, %s3542_s1 }
  0x1f   :  { %p3549_p0 = por %p3548_p13, %p3547_p12 }
  0x21   :  { %p3550_p1 = pnand %p3549_p0, %p3543_p11 }
  0x23   :  { %3553 = shalt.err (!%p3550_p1)
}
  0x24   :  { %25 = dma.hbm_to_vmem [thread:$0]  %s4632_s0, 128, %s23_s16, [#allocation3]  }
  0x25   :  { %s3554_s30 = scalar_lea.hbm %s4635_s3, 2048 }
  0x26   :  { %p3555_p2 = scmp.ne.s32.totalorder %s4635_s3, %s3554_s30  ;;  %p3558_p3 = scmp.lt.u32.totalorder %s3554_s30, %s4635_s3 }
  0x28   :  { %p3560_p4 = pnand %p3558_p3, %p3555_p2 }
  0x2a   :  { %3563 = shalt.err (!%p3560_p4)
}
  0x2b   :  { %s3564_s14 = scalar_lea.vmem %s46_s18, 2048  ;;  %p3569_p6 = scmp.lt.s32.totalorder %s46_s18, %s46_s18 }
  0x2c   :  { %p3565_p5 = scmp.ne.s32.totalorder %s46_s18, %s3564_s14  ;;  %p3570_p7 = scmp.lt.s32.totalorder %s3564_s14, %s3564_s14 }
  0x2e   :  { %p3571_p8 = por %p3570_p7, %p3569_p6 }
  0x30   :  { %p3572_p9 = pnand %p3571_p8, %p3565_p5 }
  0x32   :  { %3575 = shalt.err (!%p3572_p9)
}
  0x33   :  { %51 = dma.hbm_to_vmem [thread:$0]  %s4635_s3, 2048, %s46_s18, [#allocation6], %s3629_s11, %s3629_s11, %s3630_s12  }
  0x34   :  { %s3633_s16 = smov [#allocation8]   ;;  %s3576_s21 = scalar_lea.hbm %s4637_s5, 2048 }
  0x35   :  { %s59_s17 = sshll.u32 %s3633_s16, 4  ;;  %p3577_p10 = scmp.ne.s32.totalorder %s4637_s5, %s3576_s21  ;;  %s60_s17 = int_to_ptr.vmem [resolvable:$true] %s59_s17 }
  0x36   :  { %p3580_p11 = scmp.lt.u32.totalorder %s3576_s21, %s4637_s5 }
  0x38   :  { %p3582_p12 = pnand %p3580_p11, %p3577_p10 }
  0x3a   :  { %3585 = shalt.err (!%p3582_p12)
}
  0x3b   :  { %s3586_s1 = scalar_lea.vmem %s60_s17, 2048  ;;  %p3591_p0 = scmp.lt.s32.totalorder %s60_s17, %s60_s17 }
  0x3c   :  { %p3587_p13 = scmp.ne.s32.totalorder %s60_s17, %s3586_s1  ;;  %p3592_p1 = scmp.lt.s32.totalorder %s3586_s1, %s3586_s1 }
  0x3e   :  { %p3593_p2 = por %p3592_p1, %p3591_p0 }
  0x40   :  { %p3594_p3 = pnand %p3593_p2, %p3587_p13 }
  0x42   :  { %3597 = shalt.err (!%p3594_p3)
}
  0x43   :  { %65 = dma.hbm_to_vmem [thread:$0]  %s4637_s5, 2048, %s60_s17, [#allocation9], %s3629_s11, %s3629_s11, %s3630_s12  }
  0x44   :  { %3620 = dma.done.wait [#allocation3], 128  }
  0x45   :  { %3621 = vsyncadd [#allocation3], 4294967168 }
  0x46   :  { %3622 = dma.done.wait [#allocation6], 4096  }
  0x47   :  { %3623 = vsyncadd [#allocation6], 4294963200 }
  0x48   :  { %3624 = dma.done.wait [#allocation9], 2048  }
  0x49   :  { %3625 = vsyncadd [#allocation9], 4294965248  ;;  %v4656_v0 = vmov 0.0|0.0   ;;  %vm3635_vm0 = vmmov 0   ;;  %v4650_v1 = vmov 0.0   ;;  %v81_v2 = vld [vmem:[#allocation5] sm:$0xff] }
  0x4a   :  { %3036 = vmatprep.subr.bf16.mxu1 %v4656_v0  ;;  %3108 = vmatprep.subr.bf16.mxu0 %v4656_v0  ;;  %v82_v3 = vld [vmem:[#allocation5 + $0x8] sm:$0xff]  ;;  %v83_v4 = vld [vmem:[#allocation5 + $0x10] sm:$0xff]  ;;  %v105_v5 = vand.u32 4294901760, %v81_v2  ;;  %v84_v7 = vld [vmem:[#allocation5 + $0x18] sm:$0xff]  ;;  %s3637_s27 = smov [#allocation10]  }
  0x4b   :  { %2438 = vmatprep.mubr.msk.f32.mxu1 %vm3635_vm0, %v4650_v1  ;;  %2543 = vmatprep.mubr.msk.f32.mxu0 %vm3635_vm0, %v4650_v1  ;;  %v108_v6 = vand.u32 4294901760, %v82_v3  ;;  %v111_v8 = vand.u32 4294901760, %v83_v4  ;;  %v114_v9 = vand.u32 4294901760, %v84_v7  ;;  %v85_v10 = vld [vmem:[#allocation5 + $0x20] sm:$0xff]  ;;  %v86_v11 = vld [vmem:[#allocation5 + $0x28] sm:$0xff]  ;;  %v3749_v16 = vld [vmem:[#allocation5 + $0x30] sm:$0xff] }
  0x4c   :  { %v117_v14 = vand.u32 4294901760, %v85_v10  ;;  %v120_v15 = vand.u32 4294901760, %v86_v11  ;;  %v3751_v17 = vld [vmem:[#allocation5 + $0x38] sm:$0xff]  ;;  %v123_v19 = vand.u32 4294901760, %v3749_v16  ;;  %v89_v21 = vld [vmem:[#allocation5 + $0x40] sm:$0xff]  ;;  %v90_v22 = vld [vmem:[#allocation5 + $0x48] sm:$0xff]  ;;  %v3769_v27 = vsub.f32 %v81_v2, %v105_v5 }
  0x4d   :  { %v3741_v12 = vpack.c.bf16 %v108_v6, %v105_v5  ;;  %v3745_v13 = vpack.c.bf16 %v114_v9, %v111_v8  ;;  %v126_v20 = vand.u32 4294901760, %v3751_v17  ;;  %v129_v24 = vand.u32 4294901760, %v89_v21  ;;  %v80_v26 = vld [vmem:[#allocation2] sm:$0xff]  ;;  %v3775_v29 = vld [vmem:[#allocation5 + $0x50] sm:$0xff]  ;;  %v3793_v37 = vld [vmem:[#allocation5 + $0x60] sm:$0xff]  ;;  %s2086_s28 = sshll.u32 %s3637_s27, 4  ;;  %s2087_s28 = int_to_ptr.vmem [resolvable:$true] %s2086_s28 }
  0x4e   :  { %v3755_v18 = vpack.c.bf16 %v120_v15, %v117_v14  ;;  %v132_v25 = vand.u32 4294901760, %v90_v22  ;;  %v3771_v28 = vsub.f32 %v82_v3, %v108_v6  ;;  %v3777_v30 = vld [vmem:[#allocation5 + $0x58] sm:$0xff]  ;;  %v3779_v31 = vand.u32 4294901760, %v80_v26  ;;  %v3795_v38 = vld [vmem:[#allocation5 + $0x68] sm:$0xff]  ;;  %v3814_v46 = vld [vmem:[#allocation5 + $0x70] sm:$0xff]  ;;  %s3598_s29 = scalar_lea.vmem %s2087_s28, 128  ;;  %p3603_p5 = scmp.lt.s32.totalorder %s2087_s28, %s2087_s28 }
  0x4f   :  { %3038 = vmatpush3.bf16.msra.mxu1 %v3741_v12  ;;  %3110 = vmatpush3.bf16.msra.mxu0 %v3741_v12  ;;  %v3767_v23 = vpack.c.bf16 %v126_v20, %v123_v19  ;;  %v3781_v32 = vsub.f32 %v83_v4, %v111_v8  ;;  %v135_v34 = vand.u32 4294901760, %v3775_v29  ;;  %v138_v35 = vand.u32 4294901760, %v3777_v30  ;;  %v3816_v47 = vld [vmem:[#allocation5 + $0x78] sm:$0xff]  ;;  %v3847_v63 = vld [vmem:[#allocation7] sm:$0xff]  ;;  %v3859_v4 = vld [vmem:[#allocation7 + $0x8] sm:$0xff]  ;;  %p3599_p4 = scmp.ne.s32.totalorder %s2087_s28, %s3598_s29  ;;  %p3604_p6 = scmp.lt.s32.totalorder %s3598_s29, %s3598_s29 }
  0x50   :  { %3039 = vmatprep.subr.bf16.mxu1 %v4656_v0  ;;  %3111 = vmatprep.subr.bf16.mxu0 %v4656_v0  ;;  %v3785_v33 = vpack.c.bf16 %v132_v25, %v129_v24  ;;  %v3789_v36 = vsub.f32 %v84_v7, %v114_v9  ;;  %v198_v39 = vand.u32 4294901760, %v3769_v27  ;;  %v205_v40 = vand.u32 4294901760, %v3771_v28  ;;  %v3872_v9 = vld [vmem:[#allocation7 + $0x10] sm:$0xff] }
  0x51   :  { %v3799_v41 = vsub.f32 %v85_v10, %v117_v14  ;;  %v3802_v42 = vsub.f32 %v80_v26, %v3779_v31  ;;  %v3810_v43 = vpack.c.bf16 %v138_v35, %v135_v34  ;;  %v141_v44 = vand.u32 4294901760, %v3793_v37  ;;  %v3874_v10 = vld [vmem:[#allocation7 + $0x18] sm:$0xff]  ;;  %p3605_p7 = por %p3604_p6, %p3603_p5 }
  0x52   :  { %v4652_v45 = vand.u32 4294901760, %v3795_v38  ;;  %v212_v48 = vand.u32 4294901760, %v3781_v32  ;;  %v3819_v49 = vsub.f32 %v86_v11, %v120_v15  ;;  %v199_v50 = vsub.f32 %v3769_v27, %v198_v39 }
  0x53   :  { %3041 = vmatpush3.bf16.msra.mxu1 %v3745_v13  ;;  %3113 = vmatpush3.bf16.msra.mxu0 %v3745_v13  ;;  %v206_v51 = vsub.f32 %v3771_v28, %v205_v40  ;;  %v219_v52 = vand.u32 4294901760, %v3789_v36  ;;  %v4643_v53 = vand.u32 4294901760, %v3814_v46  ;;  %v4641_v54 = vand.u32 4294901760, %v3816_v47  ;;  %p3606_p8 = pnand %p3605_p7, %p3599_p4 }
  0x54   :  { %3042 = vmatprep.subr.bf16.mxu1 %v4656_v0  ;;  %3114 = vmatprep.subr.bf16.mxu0 %v4656_v0  ;;  %v187_v55 = vand.u32 4294901760, %v3802_v42  ;;  %v3835_v56 = vpack.c.bf16 %v4652_v45, %v141_v44  ;;  %v3840_v57 = vsub.f32 %v3781_v32, %v212_v48  ;;  %v4647_v58 = vand.u32 4294901760, %v3799_v41 }
  0x55   :  { %v200_v59 = vand.u32 4294901760, %v199_v50  ;;  %v207_v60 = vand.u32 4294901760, %v206_v51  ;;  %v220_v61 = vsub.f32 %v3789_v36, %v219_v52  ;;  %v4645_v62 = vand.u32 4294901760, %v3819_v49  ;;  %v3903_v51 = vld [vmem:[#allocation7 + $0x38] sm:$0xff] }
  0x56   :  { %v3852_v2 = vsub.f32 %v3749_v16, %v123_v19  ;;  %v3857_v3 = vsub.f32 %v3751_v17, %v126_v20  ;;  %v3861_v5 = vsub.f32 %v89_v21, %v129_v24  ;;  %v3863_v6 = vsub.f32 %v90_v22, %v132_v25  ;;  %v3883_v17 = vld [vmem:[#allocation7 + $0x20] sm:$0xff]  ;;  %v3885_v19 = vld [vmem:[#allocation7 + $0x28] sm:$0xff]  ;;  %v3893_v25 = vld [vmem:[#allocation7 + $0x30] sm:$0xff] }
  0x57   :  { %3044 = vmatpush3.bf16.msra.mxu1 %v3755_v18  ;;  %3116 = vmatpush3.bf16.msra.mxu0 %v3755_v18  ;;  %v3869_v7 = vpack.c.bf16 %v4641_v54, %v4643_v53  ;;  %v188_v8 = vsub.f32 %v3802_v42, %v187_v55  ;;  %v3133_v11 = vpack.c.bf16 %v205_v40, %v198_v39  ;;  %v214_v14 = vand.u32 4294901760, %v3840_v57 }
  0x58   :  { %3045 = vmatprep.subr.bf16.mxu1 %v4656_v0  ;;  %3117 = vmatprep.subr.bf16.mxu0 %v4656_v0  ;;  %v227_v15 = vsub.f32 %v3799_v41, %v4647_v58  ;;  %v4640_v16 = vand.u32 4294901760, %v3847_v63  ;;  %v3061_v20 = vpack.c.bf16 %v207_v60, %v200_v59  ;;  %v221_v21 = vand.u32 4294901760, %v220_v61 }
  0x59   :  { %v234_v22 = vsub.f32 %v3819_v49, %v4645_v62  ;;  %v4642_v24 = vand.u32 4294901760, %v3859_v4  ;;  %v240_v26 = vand.u32 4294901760, %v3852_v2  ;;  %v4644_v40 = vand.u32 4294901760, %v3872_v9 }
  0x5a   :  { %v3899_v39 = vsub.f32 %v3847_v63, %v4640_v16  ;;  %v4646_v50 = vand.u32 4294901760, %v3874_v10  ;;  %v189_v57 = vand.u32 4294901760, %v188_v8  ;;  %v4648_v60 = vand.u32 4294901760, %v3883_v17 }
  0x5b   :  { %3047 = vmatpush3.bf16.msra.mxu1 %v3767_v23  ;;  %3119 = vmatpush3.bf16.msra.mxu0 %v3767_v23  ;;  %v3908_v59 = vsub.f32 %v3859_v4, %v4642_v24  ;;  %v4649_v61 = vand.u32 4294901760, %v3885_v19  ;;  %v247_v16 = vand.u32 4294901760, %v3857_v3  ;;  %v3918_v54 = vsub.f32 %v3872_v9, %v4644_v40 }
  0x5c   :  { %3048 = vmatprep.subr.bf16.mxu1 %v4656_v0  ;;  %3120 = vmatprep.subr.bf16.mxu0 %v4656_v0  ;;  %v3923_v8 = vsub.f32 %v3874_v10, %v4646_v50  ;;  %v4654_v24 = vand.u32 4294901760, %v3893_v25  ;;  %v3931_v53 = vsub.f32 %v3883_v17, %v4648_v60  ;;  %v4653_v62 = vand.u32 4294901760, %v3903_v51 }
  0x5d   :  { %v3936_v40 = vsub.f32 %v3885_v19, %v4649_v61  ;;  %v3942_v50 = vsub.f32 %v3775_v29, %v135_v34  ;;  %v3947_v58 = vsub.f32 %v3777_v30, %v138_v35  ;;  %v3136_v60 = vpack.c.bf16 %v219_v52, %v212_v48 }
  0x5e   :  { %v3954_v61 = vsub.f32 %v3893_v25, %v4654_v24  ;;  %v228_v1 = vand.u32 4294901760, %v227_v15  ;;  %v235_v45 = vand.u32 4294901760, %v234_v22  ;;  %v254_v29 = vand.u32 4294901760, %v3861_v5 }
  0x5f   :  { %3050 = vmatpush3.bf16.msra.mxu1 %v3785_v33  ;;  %3122 = vmatpush3.bf16.msra.mxu0 %v3785_v33  ;;  %v3960_v34 = vsub.f32 %v3903_v51, %v4653_v62  ;;  %v3064_v30 = vpack.c.bf16 %v221_v21, %v214_v14  ;;  %v241_v35 = vsub.f32 %v3852_v2, %v240_v26  ;;  %v261_v52 = vand.u32 4294901760, %v3863_v6 }
  0x60   :  { %3051 = vmatprep.subr.bf16.mxu1 %v4656_v0  ;;  %3123 = vmatprep.subr.bf16.mxu0 %v4656_v0  ;;  %4674 = vst [vmem:[#allocation15_spill] sm:$0xff] %v3954_v61  ;;  %v248_v48 = vsub.f32 %v3857_v3, %v247_v16  ;;  %v4676_v15 = vand.u32 4294901760, %v3795_v38  ;;  %v4677_v14 = vmov 0.0   ;;  %v4678_v21 = vand.u32 4294901760, %v3799_v41 }
  0x61   :  { %4675 = vst [vmem:[#allocation16_spill] sm:$0xff] %v3960_v34  ;;  %v4679_v22 = vand.u32 4294901760, %v3819_v49  ;;  %v262_v62 = vsub.f32 %v3863_v6, %v261_v52  ;;  %v275_v24 = vand.u32 4294901760, %v3947_v58 }
  0x63   :  { %3053 = vmatpush3.bf16.msra.mxu1 %v3810_v43  ;;  %3125 = vmatpush3.bf16.msra.mxu0 %v3810_v43  ;;  %v276_v61 = vsub.f32 %v3947_v58, %v275_v24 }
  0x64   :  { %3054 = vmatprep.subr.bf16.mxu1 %v4656_v0  ;;  %3126 = vmatprep.subr.bf16.mxu0 %v4656_v0 }
  0x67   :  { %3056 = vmatpush3.bf16.msra.mxu1 %v3835_v56  ;;  %3128 = vmatpush3.bf16.msra.mxu0 %v3835_v56 }
  0x68   :  { %3057 = vmatprep.subr.bf16.mxu1 %v4656_v0  ;;  %3129 = vmatprep.subr.bf16.mxu0 %v4656_v0 }
  0x6b   :  { %3059 = vmatpush3.bf16.msra.mxu1 %v3869_v7  ;;  %3131 = vmatpush3.bf16.msra.mxu0 %v3869_v7 }
  0x6c   :  { %3060 = vmatprep.subr.bf16.mxu1 %v4656_v0  ;;  %3132 = vmatprep.subr.bf16.mxu0 %v4656_v0 }
  0x6e   :  { %2439 = vmatmul.mubr.f32.vlgmr.msra.gmra.mrb[0].mxu1 %v189_v57  ;;  %2544 = vmatmul.mubr.f32.vlgmr.msra.gmra.mrb[0].mxu0 %v187_v55  ;;  %v3970_v55 = vsub.f32 %v3793_v37, %v141_v44  ;;  %v3139_v57 = vpack.c.bf16 %v4679_v22, %v4678_v21  ;;  %v255_v37 = vsub.f32 %v3861_v5, %v254_v29  ;;  %v268_v44 = vand.u32 4294901760, %v3942_v50 }
  0x6f   :  { %3062 = vmatpush3.bf16.msra.mxu1 %v3061_v20  ;;  %3134 = vmatpush3.bf16.msra.mxu0 %v3133_v11  ;;  %v3975_v11 = vsub.f32 %v3795_v38, %v4676_v15  ;;  %v3067_v20 = vpack.c.bf16 %v235_v45, %v228_v1  ;;  %v242_v38 = vand.u32 4294901760, %v241_v35  ;;  %v249_v15 = vand.u32 4294901760, %v248_v48 }
  0x70   :  { %3063 = vmatprep.subr.bf16.mxu1 %v4656_v0  ;;  %3135 = vmatprep.subr.bf16.mxu0 %v4656_v0  ;;  %v4680_v1 = vand.u32 4294901760, %v3814_v46  ;;  %v4681_v21 = vand.u32 4294901760, %v3816_v47  ;;  %v256_v35 = vand.u32 4294901760, %v255_v37  ;;  %v269_v48 = vsub.f32 %v3942_v50, %v268_v44 }
  0x71   :  { %2473 = vmatprep.mubr.msk.f32.mxu1 %vm3635_vm0, %v4677_v14  ;;  %2578 = vmatprep.mubr.msk.f32.mxu0 %vm3635_vm0, %v4677_v14  ;;  %v282_v22 = vand.u32 4294901760, %v3970_v55  ;;  %v3070_v34 = vpack.c.bf16 %v249_v15, %v242_v38  ;;  %v3148_v38 = vpack.c.bf16 %v275_v24, %v268_v44 }
  0x72   :  { %v3994_v45 = vsub.f32 %v3814_v46, %v4680_v1  ;;  %v289_v46 = vand.u32 4294901760, %v3975_v11  ;;  %v4682_v1 = vmov 0.0|0.0  }
  0x73   :  { %3065 = vmatpush3.bf16.msra.mxu1 %v3064_v30  ;;  %3137 = vmatpush3.bf16.msra.mxu0 %v3136_v60  ;;  %v3999_v30 = vsub.f32 %v3816_v47, %v4681_v21  ;;  %v3142_v60 = vpack.c.bf16 %v247_v16, %v240_v26  ;;  %v3145_v47 = vpack.c.bf16 %v261_v52, %v254_v29  ;;  %v270_v21 = vand.u32 4294901760, %v269_v48 }
  0x74   :  { %3066 = vmatprep.subr.bf16.mxu1 %v4656_v0  ;;  %3138 = vmatprep.subr.bf16.mxu0 %v4656_v0  ;;  %v263_v0 = vand.u32 4294901760, %v262_v62  ;;  %v283_v16 = vsub.f32 %v3970_v55, %v282_v22  ;;  %v296_v26 = vand.u32 4294901760, %v3994_v45  ;;  %v290_v62 = vsub.f32 %v3975_v11, %v289_v46 }
  0x75   :  { %v303_v37 = vand.u32 4294901760, %v3999_v30 }
  0x76   :  { %v284_v15 = vand.u32 4294901760, %v283_v16  ;;  %v291_v52 = vand.u32 4294901760, %v290_v62  ;;  %v297_v48 = vsub.f32 %v3994_v45, %v296_v26 }
  0x77   :  { %3068 = vmatpush3.bf16.msra.mxu1 %v3067_v20  ;;  %3140 = vmatpush3.bf16.msra.mxu0 %v3139_v57  ;;  %v3073_v20 = vpack.c.bf16 %v263_v0, %v256_v35  ;;  %v277_v57 = vand.u32 4294901760, %v276_v61  ;;  %v3151_v61 = vpack.c.bf16 %v289_v46, %v282_v22  ;;  %v3154_v44 = vpack.c.bf16 %v303_v37, %v296_v26  ;;  %v763_v46 = vld [vmem:[#allocation7 + $0x78] sm:$0xff] }
  0x78   :  { %3069 = vmatprep.subr.bf16.mxu1 %v4682_v1  ;;  %3141 = vmatprep.subr.bf16.mxu0 %v4682_v1  ;;  %v3079_v0 = vpack.c.bf16 %v291_v52, %v284_v15  ;;  %v3088_v22 = vpack.c.bf16 %v3789_v36, %v3781_v32  ;;  %v4683_v32 = vand.u32 4294901760, %v3847_v63  ;;  %v4690_v63 = vand.u32 4294901760, %v3903_v51  ;;  %v761_v51 = vld [vmem:[#allocation7 + $0x68] sm:$0xff] }
  0x79   :  { %v3076_v29 = vpack.c.bf16 %v277_v57, %v270_v21  ;;  %v865_v15 = vand.u32 4294901760, %v3899_v39 }
  0x7b   :  { %3071 = vmatpush3.bf16.msra.mxu1 %v3070_v34  ;;  %3143 = vmatpush3.bf16.msra.mxu0 %v3142_v60  ;;  %v304_v34 = vsub.f32 %v3999_v30, %v303_v37  ;;  %v298_v60 = vand.u32 4294901760, %v297_v48 }
  0x7c   :  { %3072 = vmatprep.subr.bf16.mxu1 %v4682_v1  ;;  %3144 = vmatprep.subr.bf16.mxu0 %v4682_v1 }
  0x7d   :  { %v305_v35 = vand.u32 4294901760, %v304_v34 }
  0x7f   :  { %3074 = vmatpush3.bf16.msra.mxu1 %v3073_v20  ;;  %3146 = vmatpush3.bf16.msra.mxu0 %v3145_v47  ;;  %v3082_v24 = vpack.c.bf16 %v305_v35, %v298_v60  ;;  %v3085_v47 = vpack.c.bf16 %v3771_v28, %v3769_v27  ;;  %v3091_v27 = vpack.c.bf16 %v3819_v49, %v3799_v41  ;;  %v4685_v41 = vand.u32 4294901760, %v3872_v9  ;;  %v758_v9 = vld [vmem:[#allocation7 + $0x50] sm:$0xff] }
  0x80   :  { %3075 = vmatprep.subr.bf16.mxu1 %v4682_v1  ;;  %3147 = vmatprep.subr.bf16.mxu0 %v4682_v1  ;;  %v3106_v28 = vpack.c.bf16 %v3999_v30, %v3994_v45  ;;  %v762_v30 = vld [vmem:[#allocation7 + $0x70] sm:$0xff]  ;;  %v879_v60 = vand.u32 4294901760, %v3918_v54  ;;  %v886_v35 = vand.u32 4294901760, %v3923_v8 }
  0x81   :  { %v814_v37 = vand.u32 4294901760, %v762_v30 }
  0x83   :  { %3077 = vmatpush3.bf16.msra.mxu1 %v3076_v29  ;;  %3149 = vmatpush3.bf16.msra.mxu0 %v3148_v38  ;;  %v817_v38 = vand.u32 4294901760, %v763_v46  ;;  %v872_v29 = vand.u32 4294901760, %v3908_v59  ;;  %v4135_v48 = vsub.f32 %v762_v30, %v814_v37 }
  0x84   :  { %3078 = vmatprep.subr.bf16.mxu1 %v4682_v1  ;;  %3150 = vmatprep.subr.bf16.mxu0 %v4682_v1 }
  0x85   :  { %v4133_v52 = vpack.c.bf16 %v817_v38, %v814_v37  ;;  %v4137_v34 = vsub.f32 %v763_v46, %v817_v38 }
  0x87   :  { %3080 = vmatpush3.bf16.msra.mxu1 %v3079_v0  ;;  %3152 = vmatpush3.bf16.msra.mxu0 %v3151_v61  ;;  %v866_v0 = vsub.f32 %v3899_v39, %v865_v15  ;;  %v873_v61 = vsub.f32 %v3908_v59, %v872_v29 }
  0x88   :  { %3081 = vmatprep.subr.bf16.mxu1 %v4682_v1  ;;  %3153 = vmatprep.subr.bf16.mxu0 %v4682_v1 }
  0x8b   :  { %3083 = vmatpush3.bf16.msra.mxu1 %v3082_v24  ;;  %3155 = vmatpush3.bf16.msra.mxu0 %v3154_v44  ;;  %v867_v24 = vand.u32 4294901760, %v866_v0  ;;  %v874_v44 = vand.u32 4294901760, %v873_v61 }
  0x8c   :  { %3084 = vmatprep.subr.bf16.mxu1 %v4682_v1  ;;  %3156 = vmatprep.subr.bf16.mxu0 %v4682_v1 }
  0x8e   :  { %2474 = vmatmul.mubr.f32.vlgmr.msra.gmra.mrb[0].mxu1 %v3779_v31  ;;  %2579 = vmatmul.mubr.f32.vlgmr.msra.gmra.mrb[0].mxu0 %v3779_v31 }
  0x8f   :  { %3086 = vmatpush3.bf16.msra.mxu1 %v3085_v47  ;;  %3158 = vmatpush3.bf16.msra.mxu0 %v3741_v12  ;;  %v3094_v12 = vpack.c.bf16 %v3857_v3, %v3852_v2  ;;  %v756_v3 = vld [vmem:[#allocation7 + $0x40] sm:$0xff]  ;;  %v880_v47 = vsub.f32 %v3918_v54, %v879_v60 }
  0x90   :  { %3087 = vmatprep.subr.bf16.mxu1 %v4682_v1  ;;  %3159 = vmatprep.subr.bf16.mxu0 %v4682_v1 }
  0x91   :  { %2508 = vmatprep.mubr.msk.f32.mxu1 %vm3635_vm0, %v4677_v14  ;;  %2613 = vmatprep.mubr.msk.f32.mxu0 %vm3635_vm0, %v4677_v14 }
  0x93   :  { %3089 = vmatpush3.bf16.msra.mxu1 %v3088_v22  ;;  %3161 = vmatpush3.bf16.msra.mxu0 %v3745_v13  ;;  %v3097_v13 = vpack.c.bf16 %v3863_v6, %v3861_v5  ;;  %v796_v5 = vand.u32 4294901760, %v756_v3  ;;  %v887_v22 = vsub.f32 %v3923_v8, %v886_v35 }
  0x94   :  { %3090 = vmatprep.subr.bf16.mxu1 %v4682_v1  ;;  %3162 = vmatprep.subr.bf16.mxu0 %v4682_v1 }
  0x95   :  { %v4117_v21 = vsub.f32 %v756_v3, %v796_v5 }
  0x97   :  { %3092 = vmatpush3.bf16.msra.mxu1 %v3091_v27  ;;  %3164 = vmatpush3.bf16.msra.mxu0 %v3755_v18  ;;  %v3100_v18 = vpack.c.bf16 %v3947_v58, %v3942_v50  ;;  %v4689_v58 = vand.u32 4294901760, %v3893_v25  ;;  %v760_v50 = vld [vmem:[#allocation7 + $0x60] sm:$0xff]  ;;  %v4155_v27 = vpack.c.bf16 %v874_v44, %v867_v24 }
  0x98   :  { %3093 = vmatprep.subr.bf16.mxu1 %v4682_v1  ;;  %3165 = vmatprep.subr.bf16.mxu0 %v4682_v1 }
  0x99   :  { %v4102_v2 = vpack.c.bf16 %v4690_v63, %v4689_v58  ;;  %v4692_v58 = vld [vmem:[#allocation16_spill] sm:$0xff] }
  0x9a   :  { %v4667_v63 = vand.u32 4294901760, %v4692_v58 }
  0x9b   :  { %3095 = vmatpush3.bf16.msra.mxu1 %v3094_v12  ;;  %3167 = vmatpush3.bf16.msra.mxu0 %v3767_v23  ;;  %v3103_v23 = vpack.c.bf16 %v3975_v11, %v3970_v55  ;;  %v808_v55 = vand.u32 4294901760, %v760_v50  ;;  %v811_v11 = vand.u32 4294901760, %v761_v51  ;;  %v881_v12 = vand.u32 4294901760, %v880_v47 }
  0x9c   :  { %3096 = vmatprep.subr.bf16.mxu1 %v4682_v1  ;;  %3168 = vmatprep.subr.bf16.mxu0 %v4682_v1 }
  0x9d   :  { %v4115_v45 = vpack.c.bf16 %v811_v11, %v808_v55  ;;  %v4126_v57 = vsub.f32 %v760_v50, %v808_v55  ;;  %v4128_v62 = vsub.f32 %v761_v51, %v811_v11 }
  0x9f   :  { %3098 = vmatpush3.bf16.msra.mxu1 %v3097_v13  ;;  %3170 = vmatpush3.bf16.msra.mxu0 %v3785_v33  ;;  %v4684_v33 = vand.u32 4294901760, %v3859_v4  ;;  %v757_v4 = vld [vmem:[#allocation7 + $0x48] sm:$0xff]  ;;  %v888_v13 = vand.u32 4294901760, %v887_v22  ;;  %v4662_v44 = vand.u32 4294901760, %v4126_v57  ;;  %v4661_v47 = vand.u32 4294901760, %v4128_v62 }
  0xa0   :  { %3099 = vmatprep.subr.bf16.mxu1 %v4682_v1  ;;  %3171 = vmatprep.subr.bf16.mxu0 %v4682_v1  ;;  %v799_v6 = vand.u32 4294901760, %v757_v4 }
  0xa1   :  { %v4071_v36 = vpack.c.bf16 %v4684_v33, %v4683_v32 }
  0xa2   :  { %v4119_v16 = vsub.f32 %v757_v4, %v799_v6 }
  0xa3   :  { %3101 = vmatpush3.bf16.msra.mxu1 %v3100_v18  ;;  %3173 = vmatpush3.bf16.msra.mxu0 %v3810_v43  ;;  %v4686_v43 = vand.u32 4294901760, %v3874_v10  ;;  %v759_v10 = vld [vmem:[#allocation7 + $0x58] sm:$0xff]  ;;  %v893_v18 = vand.u32 4294901760, %v3931_v53 }
  0xa4   :  { %3102 = vmatprep.subr.bf16.mxu1 %v4682_v1  ;;  %3174 = vmatprep.subr.bf16.mxu0 %v4682_v1 }
  0xa5   :  { %v4082_v49 = vpack.c.bf16 %v4686_v43, %v4685_v41  ;;  %v894_v32 = vsub.f32 %v3931_v53, %v893_v18 }
  0xa7   :  { %3104 = vmatpush3.bf16.msra.mxu1 %v3103_v23  ;;  %3176 = vmatpush3.bf16.msra.mxu0 %v3835_v56  ;;  %v900_v23 = vand.u32 4294901760, %v3936_v40  ;;  %v895_v41 = vand.u32 4294901760, %v894_v32 }
  0xa8   :  { %3105 = vmatprep.subr.bf16.mxu1 %v4682_v1  ;;  %3177 = vmatprep.subr.bf16.mxu0 %v4682_v1 }
  0xa9   :  { %v901_v33 = vsub.f32 %v3936_v40, %v900_v23 }
  0xab   :  { %3107 = vmatpush3.bf16.msra.mxu1 %v3106_v28  ;;  %3179 = vmatpush3.bf16.msra.mxu0 %v3869_v7  ;;  %v4107_v7 = vpack.c.bf16 %v799_v6, %v796_v5  ;;  %v4159_v28 = vpack.c.bf16 %v888_v13, %v881_v12  ;;  %v902_v43 = vand.u32 4294901760, %v901_v33  ;;  %v915_v5 = vsub.f32 %v4692_v58, %v4667_v63 }
  0xac   :  { %3180 = vmatprep.subr.bf16.mxu1 %v4682_v1  ;;  %3324 = vmatprep.subr.bf16.mxu0 %v4682_v1  ;;  %v950_v12 = vsub.f32 %v4126_v57, %v4662_v44  ;;  %v957_v13 = vsub.f32 %v4128_v62, %v4661_v47 }
  0xad   :  { %v3211_v3 = vpack.c.bf16 %v902_v43, %v895_v41  ;;  %v4660_v41 = vand.u32 4294901760, %v4135_v48  ;;  %v4659_v43 = vand.u32 4294901760, %v4137_v34 }
  0xae   :  { %2509 = vmatmul.mubr.f32.vlgmr.msra.gmra.mrb[0].mxu1 %v3802_v42  ;;  %2614 = vmatmul.mubr.f32.vlgmr.msra.gmra.mrb[0].mxu0 %v3779_v31  ;;  %v4687_v31 = vand.u32 4294901760, %v3883_v17  ;;  %v4688_v42 = vand.u32 4294901760, %v3885_v19  ;;  %v802_v17 = vand.u32 4294901760, %v758_v9  ;;  %v805_v19 = vand.u32 4294901760, %v759_v10 }
  0xaf   :  { %3182 = vmatpush3.bf16.msra.mxu1 %v4071_v36  ;;  %2648 = vmatprep.mubr.msk.f32.mxu1 %vm3635_vm0, %v4677_v14  ;;  %v951_v32 = vand.u32 4294901760, %v950_v12  ;;  %v958_v33 = vand.u32 4294901760, %v957_v13  ;;  %v3247_v12 = vpack.c.bf16 %v4128_v62, %v4126_v57  ;;  %v3250_v13 = vpack.c.bf16 %v4137_v34, %v4135_v48 }
  0xb0   :  { %3183 = vmatprep.subr.bf16.mxu1 %v4682_v1  ;;  %2858 = vmatprep.mubr.msk.f32.mxu0 %vm3635_vm0, %v4677_v14  ;;  %v4094_v56 = vpack.c.bf16 %v4688_v42, %v4687_v31  ;;  %v4111_v25 = vpack.c.bf16 %v805_v19, %v802_v17  ;;  %v4121_v26 = vsub.f32 %v758_v9, %v802_v17  ;;  %v4691_v31 = vld [vmem:[#allocation15_spill] sm:$0xff]  ;;  %v916_v9 = vand.u32 4294901760, %v915_v5 }
  0xb1   :  { %v4123_v20 = vsub.f32 %v759_v10, %v805_v19  ;;  %v4668_v42 = vand.u32 4294901760, %v4691_v31  ;;  %v4666_v10 = vand.u32 4294901760, %v4117_v21  ;;  %v4665_v17 = vand.u32 4294901760, %v4119_v16 }
  0xb2   :  { %v4664_v30 = vand.u32 4294901760, %v4121_v26  ;;  %v964_v5 = vsub.f32 %v4135_v48, %v4660_v41 }
  0xb3   :  { %3185 = vmatpush3.bf16.msra.mxu1 %v4082_v49  ;;  %v908_v4 = vsub.f32 %v4691_v31, %v4668_v42  ;;  %v922_v50 = vsub.f32 %v4117_v21, %v4666_v10  ;;  %v929_v51 = vsub.f32 %v4119_v16, %v4665_v17  ;;  %v4663_v46 = vand.u32 4294901760, %v4123_v20 }
  0xb4   :  { %3186 = vmatprep.subr.bf16.mxu1 %v4682_v1  ;;  %v936_v38 = vsub.f32 %v4121_v26, %v4664_v30 }
  0xb5   :  { %v909_v6 = vand.u32 4294901760, %v908_v4  ;;  %v923_v55 = vand.u32 4294901760, %v922_v50  ;;  %v930_v11 = vand.u32 4294901760, %v929_v51  ;;  %v943_v0 = vsub.f32 %v4123_v20, %v4663_v46 }
  0xb6   :  { %v937_v61 = vand.u32 4294901760, %v936_v38  ;;  %v3223_v4 = vpack.c.bf16 %v958_v33, %v951_v32  ;;  %v3235_v38 = vpack.c.bf16 %v3936_v40, %v3931_v53  ;;  %v2097_v32 = vld [vmem:[%s4634_s2] ss:$0 sm:$0xff]  ;;  %v4697_v53 = vand.u32 4294901760, %v4121_v26 }
  0xb7   :  { %3188 = vmatpush3.bf16.msra.mxu1 %v4094_v56  ;;  %v3214_v19 = vpack.c.bf16 %v916_v9, %v909_v6  ;;  %v3217_v37 = vpack.c.bf16 %v930_v11, %v923_v55  ;;  %v944_v24 = vand.u32 4294901760, %v943_v0  ;;  %v971_v6 = vsub.f32 %v4137_v34, %v4659_v43 }
  0xb8   :  { %3189 = vmatprep.subr.bf16.mxu1 %v4682_v1  ;;  %v965_v9 = vand.u32 4294901760, %v964_v5  ;;  %v3229_v55 = vpack.c.bf16 %v3908_v59, %v3899_v39  ;;  %v3232_v11 = vpack.c.bf16 %v3923_v8, %v3918_v54  ;;  %v3238_v0 = vpack.c.bf16 %v4692_v58, %v4691_v31 }
  0xb9   :  { %v3220_v22 = vpack.c.bf16 %v944_v24, %v937_v61  ;;  %v972_v50 = vand.u32 4294901760, %v971_v6  ;;  %v3241_v61 = vpack.c.bf16 %v4119_v16, %v4117_v21  ;;  %v3244_v24 = vpack.c.bf16 %v4123_v20, %v4121_v26 }
  0xba   :  { %v3283_v39 = vpack.c.bf16 %v900_v23, %v893_v18  ;;  %v4693_v59 = vand.u32 4294901760, %v4691_v31  ;;  %v4694_v54 = vand.u32 4294901760, %v4692_v58  ;;  %v4698_v40 = vand.u32 4294901760, %v4123_v20  ;;  %v1426_v20 = vld [vmem:[#allocation8 + $0x58] sm:$0xff] }
  0xbb   :  { %3191 = vmatpush3.bf16.msra.mxu1 %v4102_v2  ;;  %v3226_v51 = vpack.c.bf16 %v972_v50, %v965_v9  ;;  %v4699_v18 = vand.u32 4294901760, %v4126_v57  ;;  %v4700_v23 = vand.u32 4294901760, %v4128_v62  ;;  %v1472_v57 = vand.u32 4294901760, %v1426_v20  ;;  %v1427_v62 = vld [vmem:[#allocation8 + $0x60] sm:$0xff] }
  0xbc   :  { %3192 = vmatprep.subr.bf16.mxu1 %v4682_v1  ;;  %v3286_v8 = vpack.c.bf16 %v4694_v54, %v4693_v59 }
  0xbd   :  { %v3295_v31 = vpack.c.bf16 %v4700_v23, %v4699_v18 }
  0xbf   :  { %3194 = vmatpush3.bf16.msra.mxu1 %v4107_v7 }
  0xc0   :  { %3195 = vmatprep.subr.bf16.mxu1 %v4682_v1 }
  0xc3   :  { %3197 = vmatpush3.bf16.msra.mxu1 %v4111_v25 }
  0xc4   :  { %3198 = vmatprep.subr.bf16.mxu1 %v4682_v1 }
  0xc7   :  { %3200 = vmatpush3.bf16.msra.mxu1 %v4115_v45 }
  0xc8   :  { %3201 = vmatprep.subr.bf16.mxu1 %v4682_v1 }
  0xcb   :  { %3203 = vmatpush3.bf16.msra.mxu1 %v4133_v52 }
  0xcc   :  { %3204 = vmatprep.subr.bf16.mxu1 %v4682_v1 }
 0x181   :  { %v446_v33 = vpop.f32.mrb[0].mxu1  ;;  %v741_v5 = vpop.f32.mrb[0].mxu0 }
 0x182   :  { %v3468_v6 = vadd.f32 %v2097_v32, %v446_v33  ;;  %v2510_v9 = vpop.f32.mrb[1].mxu1  ;;  %v2615_v50 = vpop.f32.mrb[1].mxu0  ;;  %v1422_v32 = vld [vmem:[#allocation8 + $0x38] sm:$0xff] }
 0x184   :  { %v3469_v43 = vadd.f32 %v3468_v6, %v741_v5 }
 0x186   :  { %vm745_vm1 = vcmp.ge.f32.partialorder %v3469_v43, 0.0  ;;  %v746_v41 = vmul.f32 0.1, %v3469_v43 }
 0x188   :  { %v747_v47 = vsel %vm745_vm1, %v3469_v43, %v746_v41 }
 0x189   :  { %v4226_v44 = vand.u32 4294901760, %v747_v47 }
 0x18b   :  { %v4229_v46 = vsub.f32 %v747_v47, %v4226_v44  ;;  %v1419_v47 = vld [vmem:[#allocation8 + $0x20] sm:$0xff] }
 0x18c   :  { %v1451_v43 = vand.u32 4294901760, %v1419_v47 }
 0x18d   :  { %v854_v30 = vand.u32 4294901760, %v4229_v46 }
 0x18e   :  { %v4261_v50 = vsub.f32 %v1419_v47, %v1451_v43 }
 0x18f   :  { %v855_v17 = vsub.f32 %v4229_v46, %v854_v30 }
 0x191   :  { %v856_v10 = vand.u32 4294901760, %v855_v17 }
 0x193   :  { %2649 = vmatmul.mubr.f32.vlgmr.msra.gmra.mrb[2].mxu1 %v856_v10 }
 0x194   :  { %3206 = vmatpush3.bf16.msra.mxu1 %v4155_v27  ;;  %2683 = vmatprep.mubr.msk.f32.mxu1 %vm3635_vm0, %v4677_v14  ;;  %v1415_v27 = vld [vmem:[#allocation8] sm:$0xff] }
 0x195   :  { %3207 = vmatprep.subr.bf16.mxu1 %v4682_v1  ;;  %v1439_v10 = vand.u32 4294901760, %v1415_v27 }
 0x197   :  { %v4253_v5 = vsub.f32 %v1415_v27, %v1439_v10 }
 0x198   :  { %3209 = vmatpush3.bf16.msra.mxu1 %v4159_v28  ;;  %v1416_v28 = vld [vmem:[#allocation8 + $0x8] sm:$0xff] }
 0x199   :  { %3210 = vmatprep.subr.bf16.mxu1 %v4682_v1  ;;  %v1442_v17 = vand.u32 4294901760, %v1416_v28 }
 0x19b   :  { %v4251_v33 = vpack.c.bf16 %v1442_v17, %v1439_v10  ;;  %v1460_v10 = vand.u32 4294901760, %v1422_v32 }
 0x19c   :  { %3212 = vmatpush3.bf16.msra.mxu1 %v3211_v3  ;;  %v1417_v3 = vld [vmem:[#allocation8 + $0x10] sm:$0xff] }
 0x19d   :  { %3213 = vmatprep.subr.bf16.mxu1 %v4682_v1  ;;  %3326 = vmatpush3.bf16.msra.mxu0 %v4251_v33 }
 0x19e   :  { %3327 = vmatprep.subr.bf16.mxu0 %v4682_v1 }
 0x1a0   :  { %3215 = vmatpush3.bf16.msra.mxu1 %v3214_v19  ;;  %v1418_v19 = vld [vmem:[#allocation8 + $0x18] sm:$0xff] }
 0x1a1   :  { %3216 = vmatprep.subr.bf16.mxu1 %v4682_v1  ;;  %v1448_v41 = vand.u32 4294901760, %v1418_v19 }
 0x1a3   :  { %v4259_v9 = vsub.f32 %v1418_v19, %v1448_v41 }
 0x1a4   :  { %3218 = vmatpush3.bf16.msra.mxu1 %v3217_v37  ;;  %v1445_v37 = vand.u32 4294901760, %v1417_v3 }
 0x1a5   :  { %3219 = vmatprep.subr.bf16.mxu1 %v4682_v1 }
 0x1a6   :  { %v4257_v6 = vsub.f32 %v1417_v3, %v1445_v37  ;;  %v4267_v63 = vpack.c.bf16 %v1448_v41, %v1445_v37  ;;  %v4275_v3 = vsub.f32 %v1422_v32, %v1460_v10  ;;  %v1532_v41 = vand.u32 4294901760, %v4253_v5 }
 0x1a8   :  { %3221 = vmatpush3.bf16.msra.mxu1 %v3220_v22  ;;  %v1420_v22 = vld [vmem:[#allocation8 + $0x28] sm:$0xff]  ;;  %3329 = vmatpush3.bf16.msra.mxu0 %v4267_v63 }
 0x1a9   :  { %3222 = vmatprep.subr.bf16.mxu1 %v4682_v1  ;;  %3330 = vmatprep.subr.bf16.mxu0 %v4682_v1 }
 0x1ac   :  { %3224 = vmatpush3.bf16.msra.mxu1 %v3223_v4  ;;  %v1454_v4 = vand.u32 4294901760, %v1420_v22 }
 0x1ad   :  { %3225 = vmatprep.subr.bf16.mxu1 %v4682_v1 }
 0x1ae   :  { %v4269_v42 = vsub.f32 %v1420_v22, %v1454_v4 }
 0x1b0   :  { %3227 = vmatpush3.bf16.msra.mxu1 %v3226_v51  ;;  %v1421_v51 = vld [vmem:[#allocation8 + $0x30] sm:$0xff] }
 0x1b1   :  { %3228 = vmatprep.subr.bf16.mxu1 %v4682_v1  ;;  %v1457_v27 = vand.u32 4294901760, %v1421_v51 }
 0x1b3   :  { %2684 = vmatmul.mubr.f32.vlgmr.msra.gmra.mrb[2].mxu1 %v4226_v44 }
 0x1b4   :  { %3230 = vmatpush3.bf16.msra.mxu1 %v3229_v55  ;;  %2718 = vmatprep.mubr.msk.f32.mxu1 %vm3635_vm0, %v4677_v14  ;;  %v4255_v55 = vsub.f32 %v1416_v28, %v1442_v17  ;;  %v4273_v28 = vsub.f32 %v1421_v51, %v1457_v27  ;;  %v4289_v17 = vpack.c.bf16 %v1460_v10, %v1457_v27 }
 0x1b5   :  { %3231 = vmatprep.subr.bf16.mxu1 %v4682_v1  ;;  %v1533_v27 = vsub.f32 %v4253_v5, %v1532_v41 }
 0x1b8   :  { %3233 = vmatpush3.bf16.msra.mxu1 %v3232_v11  ;;  %v4281_v11 = vpack.c.bf16 %v1454_v4, %v1451_v43  ;;  %v1539_v43 = vand.u32 4294901760, %v4255_v55 }
 0x1b9   :  { %3234 = vmatprep.subr.bf16.mxu1 %v4682_v1 }
 0x1ba   :  { %3332 = vmatpush3.bf16.msra.mxu0 %v4281_v11  ;;  %v1540_v10 = vsub.f32 %v4255_v55, %v1539_v43 }
 0x1bb   :  { %3333 = vmatprep.subr.bf16.mxu0 %v4682_v1 }
 0x1bc   :  { %3236 = vmatpush3.bf16.msra.mxu1 %v3235_v38  ;;  %v3277_v38 = vpack.c.bf16 %v872_v29, %v865_v15  ;;  %v4695_v15 = vand.u32 4294901760, %v4117_v21  ;;  %v4696_v29 = vand.u32 4294901760, %v4119_v16  ;;  %v4701_v21 = vand.u32 4294901760, %v4135_v48 }
 0x1bd   :  { %3237 = vmatprep.subr.bf16.mxu1 %v4682_v1  ;;  %v4702_v16 = vand.u32 4294901760, %v4137_v34  ;;  %v1475_v48 = vand.u32 4294901760, %v1427_v62  ;;  %v1541_v59 = vand.u32 4294901760, %v1540_v10 }
 0x1be   :  { %3335 = vmatpush3.bf16.msra.mxu0 %v4289_v17 }
 0x1bf   :  { %3336 = vmatprep.subr.bf16.mxu0 %v4682_v1  ;;  %v3298_v58 = vpack.c.bf16 %v4702_v16, %v4701_v21  ;;  %v4412_v19 = vsub.f32 %v1427_v62, %v1475_v48  ;;  %v1574_v16 = vand.u32 4294901760, %v4273_v28 }
 0x1c0   :  { %3239 = vmatpush3.bf16.msra.mxu1 %v3238_v0  ;;  %v3280_v0 = vpack.c.bf16 %v886_v35, %v879_v60  ;;  %v3289_v60 = vpack.c.bf16 %v4696_v29, %v4695_v15  ;;  %v3292_v35 = vpack.c.bf16 %v4698_v40, %v4697_v53  ;;  %v1560_v53 = vand.u32 4294901760, %v4261_v50 }
 0x1c1   :  { %3240 = vmatprep.subr.bf16.mxu1 %v4682_v1  ;;  %v1567_v40 = vand.u32 4294901760, %v4269_v42 }
 0x1c2   :  { %v1561_v18 = vsub.f32 %v4261_v50, %v1560_v53 }
 0x1c3   :  { %v1568_v23 = vsub.f32 %v4269_v42, %v1567_v40 }
 0x1c4   :  { %3242 = vmatpush3.bf16.msra.mxu1 %v3241_v61 }
 0x1c5   :  { %3243 = vmatprep.subr.bf16.mxu1 %v4682_v1  ;;  %v1569_v21 = vand.u32 4294901760, %v1568_v23 }
 0x1c8   :  { %3245 = vmatpush3.bf16.msra.mxu1 %v3244_v24 }
 0x1c9   :  { %3246 = vmatprep.subr.bf16.mxu1 %v4682_v1 }
 0x1cc   :  { %3248 = vmatpush3.bf16.msra.mxu1 %v3247_v12 }
 0x1cd   :  { %3249 = vmatprep.subr.bf16.mxu1 %v4682_v1 }
 0x1d0   :  { %3251 = vmatpush3.bf16.msra.mxu1 %v3250_v13  ;;  %v4409_v13 = vsub.f32 %v1426_v20, %v1472_v57 }
 0x1d1   :  { %3252 = vmatprep.subr.bf16.mxu1 %v4682_v1 }
 0x1d3   :  { %2719 = vmatmul.mubr.f32.vlgmr.msra.gmra.mrb[2].mxu1 %v4229_v46  ;;  %v1429_v46 = vld [vmem:[#allocation8 + $0x70] sm:$0xff] }
 0x1d4   :  { %3254 = vmatpush3.bf16.msra.mxu1 %v4071_v36  ;;  %2753 = vmatprep.mubr.msk.f32.mxu1 %vm3635_vm0, %v4677_v14  ;;  %v1481_v47 = vand.u32 4294901760, %v1429_v46 }
 0x1d5   :  { %3255 = vmatprep.subr.bf16.mxu1 %v4682_v1 }
 0x1d6   :  { %v4421_v51 = vsub.f32 %v1429_v46, %v1481_v47 }
 0x1d8   :  { %3257 = vmatpush3.bf16.msra.mxu1 %v4082_v49 }
 0x1d9   :  { %3258 = vmatprep.subr.bf16.mxu1 %v4682_v1 }
 0x1dc   :  { %3260 = vmatpush3.bf16.msra.mxu1 %v4094_v56 }
 0x1dd   :  { %3261 = vmatprep.subr.bf16.mxu1 %v4682_v1 }
 0x1e0   :  { %3263 = vmatpush3.bf16.msra.mxu1 %v4102_v2 }
 0x1e1   :  { %3264 = vmatprep.subr.bf16.mxu1 %v4682_v1 }
 0x1e4   :  { %3266 = vmatpush3.bf16.msra.mxu1 %v4107_v7 }
 0x1e5   :  { %3267 = vmatprep.subr.bf16.mxu1 %v4682_v1 }
 0x1e8   :  { %3269 = vmatpush3.bf16.msra.mxu1 %v4111_v25 }
 0x1e9   :  { %3270 = vmatprep.subr.bf16.mxu1 %v4682_v1 }
 0x1ec   :  { %3272 = vmatpush3.bf16.msra.mxu1 %v4115_v45 }
 0x1ed   :  { %3273 = vmatprep.subr.bf16.mxu1 %v4682_v1 }
 0x1f0   :  { %3275 = vmatpush3.bf16.msra.mxu1 %v4133_v52 }
 0x1f1   :  { %3276 = vmatprep.subr.bf16.mxu1 %v4682_v1 }
 0x1f3   :  { %2754 = vmatmul.mubr.f32.vlgmr.msra.gmra.mrb[2].mxu1 %v854_v30 }
 0x1f4   :  { %3278 = vmatpush3.bf16.msra.mxu1 %v3277_v38  ;;  %2788 = vmatprep.mubr.msk.f32.mxu1 %vm3635_vm0, %v4677_v14  ;;  %v1546_v38 = vand.u32 4294901760, %v4257_v6 }
 0x1f5   :  { %3279 = vmatprep.subr.bf16.mxu1 %v4682_v1 }
 0x1f6   :  { %v1547_v54 = vsub.f32 %v4257_v6, %v1546_v38 }
 0x1f8   :  { %3281 = vmatpush3.bf16.msra.mxu1 %v3280_v0  ;;  %v1553_v0 = vand.u32 4294901760, %v4259_v9  ;;  %v1548_v29 = vand.u32 4294901760, %v1547_v54 }
 0x1f9   :  { %3282 = vmatprep.subr.bf16.mxu1 %v4682_v1 }
 0x1fc   :  { %3284 = vmatpush3.bf16.msra.mxu1 %v3283_v39  ;;  %v1534_v39 = vand.u32 4294901760, %v1533_v27 }
 0x1fd   :  { %3285 = vmatprep.subr.bf16.mxu1 %v4682_v1 }
 0x1fe   :  { %v4441_v15 = vpack.c.bf16 %v1541_v59, %v1534_v39  ;;  %v4672_v59 = vand.u32 4294901760, %v4412_v19 }
 0x200   :  { %3287 = vmatpush3.bf16.msra.mxu1 %v3286_v8  ;;  %v1554_v8 = vsub.f32 %v4259_v9, %v1553_v0 }
 0x201   :  { %3288 = vmatprep.subr.bf16.mxu1 %v4682_v1 }
 0x204   :  { %3290 = vmatpush3.bf16.msra.mxu1 %v3289_v60  ;;  %v1555_v60 = vand.u32 4294901760, %v1554_v8 }
 0x205   :  { %3291 = vmatprep.subr.bf16.mxu1 %v4682_v1 }
 0x208   :  { %3293 = vmatpush3.bf16.msra.mxu1 %v3292_v35  ;;  %v4445_v35 = vpack.c.bf16 %v1555_v60, %v1548_v29  ;;  %v1617_v29 = vsub.f32 %v4412_v19, %v4672_v59 }
 0x209   :  { %3294 = vmatprep.subr.bf16.mxu1 %v4682_v1 }
 0x20c   :  { %3296 = vmatpush3.bf16.msra.mxu1 %v3295_v31  ;;  %v1562_v31 = vand.u32 4294901760, %v1561_v18  ;;  %v1618_v18 = vand.u32 4294901760, %v1617_v29 }
 0x20d   :  { %3297 = vmatprep.subr.bf16.mxu1 %v4682_v1 }
 0x210   :  { %3299 = vmatpush3.bf16.msra.mxu1 %v3298_v58  ;;  %v1581_v58 = vand.u32 4294901760, %v4275_v3 }
 0x211   :  { %3300 = vmatprep.subr.bf16.mxu1 %v4682_v1 }
 0x213   :  { %2789 = vmatmul.mubr.f32.vlgmr.msra.gmra.mrb[2].mxu1 %v4226_v44 }
 0x214   :  { %3302 = vmatpush3.bf16.msra.mxu1 %v4071_v36  ;;  %2823 = vmatprep.mubr.msk.f32.mxu1 %vm3635_vm0, %v4677_v14  ;;  %v1423_v36 = vld [vmem:[#allocation8 + $0x40] sm:$0xff] }
 0x215   :  { %3303 = vmatprep.subr.bf16.mxu1 %v4682_v1 }
 0x218   :  { %3305 = vmatpush3.bf16.msra.mxu1 %v4082_v49  ;;  %v1424_v49 = vld [vmem:[#allocation8 + $0x48] sm:$0xff] }
 0x219   :  { %3306 = vmatprep.subr.bf16.mxu1 %v4682_v1 }
 0x21c   :  { %3308 = vmatpush3.bf16.msra.mxu1 %v4094_v56  ;;  %v1463_v56 = vand.u32 4294901760, %v1423_v36 }
 0x21d   :  { %3309 = vmatprep.subr.bf16.mxu1 %v4682_v1 }
 0x21e   :  { %v4403_v61 = vsub.f32 %v1423_v36, %v1463_v56  ;;  %v3355_v36 = vpack.c.bf16 %v1569_v21, %v1562_v31  ;;  %v4670_v31 = vand.u32 4294901760, %v4421_v51 }
 0x220   :  { %3311 = vmatpush3.bf16.msra.mxu1 %v4102_v2  ;;  %v1466_v2 = vand.u32 4294901760, %v1424_v49  ;;  %v1588_v20 = vand.u32 4294901760, %v4403_v61 }
 0x221   :  { %3312 = vmatprep.subr.bf16.mxu1 %v4682_v1 }
 0x222   :  { %v4393_v26 = vpack.c.bf16 %v1466_v2, %v1463_v56  ;;  %v4405_v24 = vsub.f32 %v1424_v49, %v1466_v2  ;;  %v1575_v49 = vsub.f32 %v4273_v28, %v1574_v16  ;;  %v1582_v56 = vsub.f32 %v4275_v3, %v1581_v58 }
 0x223   :  { %v1589_v62 = vsub.f32 %v4403_v61, %v1588_v20 }
 0x224   :  { %3314 = vmatpush3.bf16.msra.mxu1 %v4107_v7  ;;  %v1425_v7 = vld [vmem:[#allocation8 + $0x50] sm:$0xff]  ;;  %3338 = vmatpush3.bf16.msra.mxu0 %v4393_v26  ;;  %v1576_v2 = vand.u32 4294901760, %v1575_v49 }
 0x225   :  { %3315 = vmatprep.subr.bf16.mxu1 %v4682_v1  ;;  %3339 = vmatprep.subr.bf16.mxu0 %v4682_v1 }
 0x228   :  { %3317 = vmatpush3.bf16.msra.mxu1 %v4111_v25  ;;  %v1469_v25 = vand.u32 4294901760, %v1425_v7 }
 0x229   :  { %3318 = vmatprep.subr.bf16.mxu1 %v4682_v1 }
 0x22a   :  { %v4407_v12 = vsub.f32 %v1425_v7, %v1469_v25  ;;  %v1583_v7 = vand.u32 4294901760, %v1582_v56  ;;  %v1631_v56 = vsub.f32 %v4421_v51, %v4670_v31 }
 0x22c   :  { %3320 = vmatpush3.bf16.msra.mxu1 %v4115_v45  ;;  %v4397_v45 = vpack.c.bf16 %v1472_v57, %v1469_v25  ;;  %v1595_v25 = vand.u32 4294901760, %v4405_v24  ;;  %v3358_v57 = vpack.c.bf16 %v1583_v7, %v1576_v2  ;;  %v1602_v46 = vand.u32 4294901760, %v4407_v12 }
 0x22d   :  { %3321 = vmatprep.subr.bf16.mxu1 %v4682_v1  ;;  %v1632_v7 = vand.u32 4294901760, %v1631_v56 }
 0x22e   :  { %3341 = vmatpush3.bf16.msra.mxu0 %v4397_v45 }
 0x22f   :  { %3342 = vmatprep.subr.bf16.mxu0 %v4682_v1 }
 0x230   :  { %3323 = vmatpush3.bf16.msra.mxu1 %v4133_v52  ;;  %v1428_v52 = vld [vmem:[#allocation8 + $0x68] sm:$0xff] }
 0x231   :  { %v1478_v34 = vand.u32 4294901760, %v1428_v52 }
 0x233   :  { %2824 = vmatmul.mubr.f32.vlgmr.msra.gmra.mrb[2].mxu1 %v4226_v44  ;;  %v4401_v30 = vpack.c.bf16 %v1478_v34, %v1475_v48  ;;  %v1430_v44 = vld [vmem:[#allocation8 + $0x78] sm:$0xff]  ;;  %v4414_v37 = vsub.f32 %v1428_v52, %v1478_v34  ;;  %v1596_v52 = vsub.f32 %v4405_v24, %v1595_v25  ;;  %v1590_v48 = vand.u32 4294901760, %v1589_v62 }
 0x234   :  { %v1484_v22 = vand.u32 4294901760, %v1430_v44 }
 0x235   :  { %3344 = vmatpush3.bf16.msra.mxu0 %v4401_v30  ;;  %v1597_v34 = vand.u32 4294901760, %v1596_v52  ;;  %v4671_v54 = vand.u32 4294901760, %v4414_v37  ;;  %v3391_v29 = vpack.c.bf16 %v4414_v37, %v4412_v19 }
 0x236   :  { %3345 = vmatprep.subr.bf16.mxu0 %v4682_v1  ;;  %v4419_v4 = vpack.c.bf16 %v1484_v22, %v1481_v47  ;;  %v4423_v32 = vsub.f32 %v1430_v44, %v1484_v22  ;;  %v4673_v44 = vand.u32 4294901760, %v4409_v13  ;;  %v1603_v22 = vsub.f32 %v4407_v12, %v1602_v46 }
 0x237   :  { %v3361_v47 = vpack.c.bf16 %v1597_v34, %v1590_v48  ;;  %v1624_v60 = vsub.f32 %v4414_v37, %v4671_v54  ;;  %v3373_v48 = vpack.c.bf16 %v4255_v55, %v4253_v5  ;;  %v3376_v34 = vpack.c.bf16 %v4259_v9, %v4257_v6 }
 0x238   :  { %v1610_v27 = vsub.f32 %v4409_v13, %v4673_v44  ;;  %v1604_v10 = vand.u32 4294901760, %v1603_v22  ;;  %v4669_v21 = vand.u32 4294901760, %v4423_v32  ;;  %v3379_v22 = vpack.c.bf16 %v4269_v42, %v4261_v50 }
 0x239   :  { %3347 = vmatpush3.bf16.msra.mxu0 %v4419_v4  ;;  %v1625_v23 = vand.u32 4294901760, %v1624_v60  ;;  %v3394_v60 = vpack.c.bf16 %v4423_v32, %v4421_v51  ;;  %v3427_v5 = vpack.c.bf16 %v1567_v40, %v1560_v53  ;;  %v3430_v55 = vpack.c.bf16 %v1581_v58, %v1574_v16 }
 0x23a   :  { %3348 = vmatprep.subr.bf16.mxu0 %v4682_v1  ;;  %v1611_v39 = vand.u32 4294901760, %v1610_v27  ;;  %v1638_v2 = vsub.f32 %v4423_v32, %v4669_v21  ;;  %v3382_v27 = vpack.c.bf16 %v4275_v3, %v4273_v28  ;;  %v3433_v6 = vpack.c.bf16 %v1595_v25, %v1588_v20 }
 0x23b   :  { %v3367_v49 = vpack.c.bf16 %v1625_v23, %v1618_v18  ;;  %v2098_v18 = vld [vmem:[%s4636_s4] ss:$0 sm:$0xff]  ;;  %v4703_v42 = vand.u32 4294901760, %v4409_v13  ;;  %v4704_v50 = vand.u32 4294901760, %v4412_v19  ;;  %v4705_v28 = vand.u32 4294901760, %v4414_v37 }
 0x23c   :  { %v3364_v8 = vpack.c.bf16 %v1611_v39, %v1604_v10  ;;  %v1639_v62 = vand.u32 4294901760, %v1638_v2  ;;  %v3385_v10 = vpack.c.bf16 %v4405_v24, %v4403_v61  ;;  %v3388_v39 = vpack.c.bf16 %v4409_v13, %v4407_v12 }
 0x23d   :  { %v3436_v9 = vpack.c.bf16 %v4703_v42, %v1602_v46  ;;  %v3439_v3 = vpack.c.bf16 %v4705_v28, %v4704_v50  ;;  %v4706_v61 = vand.u32 4294901760, %v4421_v51  ;;  %v4707_v24 = vand.u32 4294901760, %v4423_v32 }
 0x23e   :  { %v3370_v52 = vpack.c.bf16 %v1639_v62, %v1632_v7 }
 0x306   :  { %v1408_v23 = vpop.f32.mrb[2].mxu1 }
 0x307   :  { %v3470_v56 = vadd.f32 %v2098_v18, %v1408_v23  ;;  %v2825_v2 = vpop.f32.mrb[3].mxu1 }
 0x309   :  { %vm1412_vm2 = vcmp.ge.f32.partialorder %v3470_v56, 0.0  ;;  %v1413_v7 = vmul.f32 0.1, %v3470_v56 }
 0x30b   :  { %v1414_v62 = vsel %vm1412_vm2, %v3470_v56, %v1413_v7 }
 0x30c   :  { %v4512_v21 = vand.u32 4294901760, %v1414_v62 }
 0x30e   :  { %v1520_v31 = vsub.f32 %v1414_v62, %v4512_v21 }
 0x310   :  { %v1521_v54 = vand.u32 4294901760, %v1520_v31 }
 0x312   :  { %v1522_v59 = vsub.f32 %v1520_v31, %v1521_v54 }
 0x314   :  { %v1523_v44 = vand.u32 4294901760, %v1522_v59 }
 0x316   :  { %2859 = vmatmul.mubr.f32.vlgmr.msra.gmra.mrb[2].mxu0 %v1523_v44 }
 0x317   :  { %3350 = vmatpush3.bf16.msra.mxu0 %v4441_v15  ;;  %2893 = vmatprep.mubr.msk.f32.mxu0 %vm3635_vm0, %v4677_v14  ;;  %v3421_v15 = vpack.c.bf16 %v1539_v43, %v1532_v41  ;;  %v3442_v41 = vpack.c.bf16 %v4707_v24, %v4706_v61 }
 0x318   :  { %3351 = vmatprep.subr.bf16.mxu0 %v4682_v1 }
 0x31b   :  { %3353 = vmatpush3.bf16.msra.mxu0 %v4445_v35  ;;  %v3424_v35 = vpack.c.bf16 %v1553_v0, %v1546_v38 }
 0x31c   :  { %3354 = vmatprep.subr.bf16.mxu0 %v4682_v1 }
 0x31f   :  { %3356 = vmatpush3.bf16.msra.mxu0 %v3355_v36 }
 0x320   :  { %3357 = vmatprep.subr.bf16.mxu0 %v4682_v1 }
 0x323   :  { %3359 = vmatpush3.bf16.msra.mxu0 %v3358_v57 }
 0x324   :  { %3360 = vmatprep.subr.bf16.mxu0 %v4682_v1 }
 0x327   :  { %3362 = vmatpush3.bf16.msra.mxu0 %v3361_v47 }
 0x328   :  { %3363 = vmatprep.subr.bf16.mxu0 %v4682_v1 }
 0x32b   :  { %3365 = vmatpush3.bf16.msra.mxu0 %v3364_v8 }
 0x32c   :  { %3366 = vmatprep.subr.bf16.mxu0 %v4682_v1 }
 0x32f   :  { %3368 = vmatpush3.bf16.msra.mxu0 %v3367_v49 }
 0x330   :  { %3369 = vmatprep.subr.bf16.mxu0 %v4682_v1 }
 0x333   :  { %3371 = vmatpush3.bf16.msra.mxu0 %v3370_v52 }
 0x334   :  { %3372 = vmatprep.subr.bf16.mxu0 %v4682_v1 }
 0x336   :  { %2894 = vmatmul.mubr.f32.vlgmr.msra.gmra.mrb[2].mxu0 %v4512_v21 }
 0x337   :  { %3374 = vmatpush3.bf16.msra.mxu0 %v3373_v48  ;;  %2928 = vmatprep.mubr.msk.f32.mxu0 %vm3635_vm0, %v4677_v14 }
 0x338   :  { %3375 = vmatprep.subr.bf16.mxu0 %v4682_v1 }
 0x33b   :  { %3377 = vmatpush3.bf16.msra.mxu0 %v3376_v34 }
 0x33c   :  { %3378 = vmatprep.subr.bf16.mxu0 %v4682_v1 }
 0x33f   :  { %3380 = vmatpush3.bf16.msra.mxu0 %v3379_v22 }
 0x340   :  { %3381 = vmatprep.subr.bf16.mxu0 %v4682_v1 }
 0x343   :  { %3383 = vmatpush3.bf16.msra.mxu0 %v3382_v27 }
 0x344   :  { %3384 = vmatprep.subr.bf16.mxu0 %v4682_v1 }
 0x347   :  { %3386 = vmatpush3.bf16.msra.mxu0 %v3385_v10 }
 0x348   :  { %3387 = vmatprep.subr.bf16.mxu0 %v4682_v1 }
 0x34b   :  { %3389 = vmatpush3.bf16.msra.mxu0 %v3388_v39 }
 0x34c   :  { %3390 = vmatprep.subr.bf16.mxu0 %v4682_v1 }
 0x34f   :  { %3392 = vmatpush3.bf16.msra.mxu0 %v3391_v29 }
 0x350   :  { %3393 = vmatprep.subr.bf16.mxu0 %v4682_v1 }
 0x353   :  { %3395 = vmatpush3.bf16.msra.mxu0 %v3394_v60 }
 0x354   :  { %3396 = vmatprep.subr.bf16.mxu0 %v4682_v1 }
 0x356   :  { %2929 = vmatmul.mubr.f32.vlgmr.msra.gmra.mrb[2].mxu0 %v1520_v31 }
 0x357   :  { %3398 = vmatpush3.bf16.msra.mxu0 %v4251_v33  ;;  %2963 = vmatprep.mubr.msk.f32.mxu0 %vm3635_vm0, %v4677_v14 }
 0x358   :  { %3399 = vmatprep.subr.bf16.mxu0 %v4682_v1 }
 0x35b   :  { %3401 = vmatpush3.bf16.msra.mxu0 %v4267_v63 }
 0x35c   :  { %3402 = vmatprep.subr.bf16.mxu0 %v4682_v1 }
 0x35f   :  { %3404 = vmatpush3.bf16.msra.mxu0 %v4281_v11 }
 0x360   :  { %3405 = vmatprep.subr.bf16.mxu0 %v4682_v1 }
 0x363   :  { %3407 = vmatpush3.bf16.msra.mxu0 %v4289_v17 }
 0x364   :  { %3408 = vmatprep.subr.bf16.mxu0 %v4682_v1 }
 0x367   :  { %3410 = vmatpush3.bf16.msra.mxu0 %v4393_v26 }
 0x368   :  { %3411 = vmatprep.subr.bf16.mxu0 %v4682_v1 }
 0x36b   :  { %3413 = vmatpush3.bf16.msra.mxu0 %v4397_v45 }
 0x36c   :  { %3414 = vmatprep.subr.bf16.mxu0 %v4682_v1 }
 0x36f   :  { %3416 = vmatpush3.bf16.msra.mxu0 %v4401_v30 }
 0x370   :  { %3417 = vmatprep.subr.bf16.mxu0 %v4682_v1 }
 0x373   :  { %3419 = vmatpush3.bf16.msra.mxu0 %v4419_v4 }
 0x374   :  { %3420 = vmatprep.subr.bf16.mxu0 %v4682_v1 }
 0x376   :  { %2964 = vmatmul.mubr.f32.vlgmr.msra.gmra.mrb[2].mxu0 %v1521_v54 }
 0x377   :  { %3422 = vmatpush3.bf16.msra.mxu0 %v3421_v15  ;;  %2998 = vmatprep.mubr.msk.f32.mxu0 %vm3635_vm0, %v4677_v14 }
 0x378   :  { %3423 = vmatprep.subr.bf16.mxu0 %v4682_v1 }
 0x37b   :  { %3425 = vmatpush3.bf16.msra.mxu0 %v3424_v35 }
 0x37c   :  { %3426 = vmatprep.subr.bf16.mxu0 %v4682_v1 }
 0x37f   :  { %3428 = vmatpush3.bf16.msra.mxu0 %v3427_v5 }
 0x380   :  { %3429 = vmatprep.subr.bf16.mxu0 %v4682_v1 }
 0x383   :  { %3431 = vmatpush3.bf16.msra.mxu0 %v3430_v55 }
 0x384   :  { %3432 = vmatprep.subr.bf16.mxu0 %v4682_v1 }
 0x387   :  { %3434 = vmatpush3.bf16.msra.mxu0 %v3433_v6 }
 0x388   :  { %3435 = vmatprep.subr.bf16.mxu0 %v4682_v1 }
 0x38b   :  { %3437 = vmatpush3.bf16.msra.mxu0 %v3436_v9 }
 0x38c   :  { %3438 = vmatprep.subr.bf16.mxu0 %v4682_v1 }
 0x38f   :  { %3440 = vmatpush3.bf16.msra.mxu0 %v3439_v3 }
 0x390   :  { %3441 = vmatprep.subr.bf16.mxu0 %v4682_v1 }
 0x393   :  { %3443 = vmatpush3.bf16.msra.mxu0 %v3442_v41 }
 0x394   :  { %3444 = vmatprep.subr.bf16.mxu0 %v4682_v1 }
 0x396   :  { %2999 = vmatmul.mubr.f32.vlgmr.msra.gmra.mrb[2].mxu0 %v4512_v21 }
 0x397   :  { %3446 = vmatpush3.bf16.msra.mxu0 %v4251_v33  ;;  %3033 = vmatprep.mubr.msk.f32.mxu0 %vm3635_vm0, %v4677_v14  ;;  %v2099_v14 = vld [vmem:[%s4638_s6] ss:$0 sm:$0xff] }
 0x398   :  { %3447 = vmatprep.subr.bf16.mxu0 %v4682_v1 }
 0x39b   :  { %3449 = vmatpush3.bf16.msra.mxu0 %v4267_v63 }
 0x39c   :  { %3450 = vmatprep.subr.bf16.mxu0 %v4682_v1 }
 0x39f   :  { %3452 = vmatpush3.bf16.msra.mxu0 %v4281_v11 }
 0x3a0   :  { %3453 = vmatprep.subr.bf16.mxu0 %v4682_v1 }
 0x3a3   :  { %3455 = vmatpush3.bf16.msra.mxu0 %v4289_v17 }
 0x3a4   :  { %3456 = vmatprep.subr.bf16.mxu0 %v4682_v1 }
 0x3a7   :  { %3458 = vmatpush3.bf16.msra.mxu0 %v4393_v26 }
 0x3a8   :  { %3459 = vmatprep.subr.bf16.mxu0 %v4682_v1 }
 0x3ab   :  { %3461 = vmatpush3.bf16.msra.mxu0 %v4397_v45 }
 0x3ac   :  { %3462 = vmatprep.subr.bf16.mxu0 %v4682_v1 }
 0x3af   :  { %3464 = vmatpush3.bf16.msra.mxu0 %v4401_v30 }
 0x3b0   :  { %3465 = vmatprep.subr.bf16.mxu0 %v4682_v1 }
 0x3b3   :  { %3467 = vmatpush3.bf16.msra.mxu0 %v4419_v4 }
 0x3b6   :  { %3034 = vmatmul.mubr.f32.vlgmr.msra.gmra.mrb[2].mxu0 %v4512_v21 }
 0x489   :  { %v2075_v63 = vpop.f32.mrb[2].mxu0 }
 0x48a   :  { %v3471_v33 = vadd.f32 %v2099_v14, %v2075_v63  ;;  %v3035_v11 = vpop.f32.mrb[3].mxu0 }
 0x48c   :  { %2079 = vst [vmem:[#allocation10] sm:$0xff] %v3471_v33 }
 0x48d   :  { %3609 = shalt.err (!%p3606_p8)
}
 0x48e   :  { %s3610_s9 = scalar_lea.hbm %s4639_s7, 128 }
 0x48f   :  { %p3611_p9 = scmp.ne.s32.totalorder %s4639_s7, %s3610_s9  ;;  %p3614_p10 = scmp.lt.u32.totalorder %s3610_s9, %s4639_s7 }
 0x491   :  { %p3616_p11 = pnand %p3614_p10, %p3611_p9 }
 0x493   :  { %3619 = shalt.err (!%p3616_p11)
}
 0x494   :  { %2089 = dma.vmem_to_hbm [thread:$0]  %s2087_s28, 128, %s4639_s7, [#allocation4]  }
 0x495   :  { %3626 = dma.done.wait [#allocation4], 128  }
 0x496   :  { %3627 = vsyncadd [#allocation4], 4294967168 }
 0x497   :  { %2093 = vsyncpa [#allocation3], 1 }
 0x498   :  { %2094 = vsyncpa [#allocation6], 1 }
 0x499   :  { %2095 = vsyncpa [#allocation9], 1 }
 0x49a   :  { %2096 = vsyncpa [#allocation4], 1 }

// kernel: tpu_custom_call.1
= control target key start
LH: loop header
LB: loop body
LE: loop exit
PB: predicated region body
PF: predicated region fallthrough
CT: control target
= control target key end

     0   :  { %12 = vsyncpa [#allocation3], 0  ;;  %s901_s0 = inlined_call_operand.hbm [shape: f32[8,128], index: 0, kind: input, shape index: {}]   ;;  %s902_s1 = inlined_call_operand.hbm [shape: f32[128,128], index: 1, kind: input, shape index: {}]   ;;  %s903_s2 = inlined_call_operand.vmem [shape: f32[1,128], index: 2, kind: input, shape index: {}]   ;;  %s904_s3 = inlined_call_operand.hbm [shape: f32[128,128], index: 3, kind: input, shape index: {}]   ;;  %s905_s4 = inlined_call_operand.vmem [shape: f32[1,128], index: 4, kind: input, shape index: {}]   ;;  %s906_s5 = inlined_call_operand.hbm [shape: f32[128,128], index: 5, kind: input, shape index: {}]   ;;  %s907_s6 = inlined_call_operand.vmem [shape: f32[1,128], index: 6, kind: input, shape index: {}]   ;;  %s908_s7 = inlined_call_operand.hbm [shape: f32[8,128], index: 7, kind: output, shape index: {}]  }
   0x1   :  { %13 = vsyncpa [#allocation6], 0 }
   0x2   :  { %14 = vsyncpa [#allocation9], 0 }
   0x3   :  { %15 = vsyncpa [#allocation4], 0  ;;  %s743_s24 = smov [#allocation5]   ;;  %s625_s28 = scalar_lea.hbm %s902_s1, 2048 }
   0x4   :  { %s31_s25 = sshll.u32 %s743_s24, 4  ;;  %p626_p0 = scmp.ne.s32.totalorder %s902_s1, %s625_s28  ;;  %s32_s25 = int_to_ptr.vmem [resolvable:$true] %s31_s25 }
   0x5   :  { %p629_p1 = scmp.lt.u32.totalorder %s625_s28, %s902_s1 }
   0x7   :  { %p631_p2 = pnand %p629_p1, %p626_p0 }
   0x9   :  { %634 = shalt.err (!%p631_p2)
}
   0xa   :  { %s635_s10 = scalar_lea.vmem %s32_s25, 2048  ;;  %p640_p4 = scmp.lt.s32.totalorder %s32_s25, %s32_s25 }
   0xb   :  { %p636_p3 = scmp.ne.s32.totalorder %s32_s25, %s635_s10  ;;  %p641_p5 = scmp.lt.s32.totalorder %s635_s10, %s635_s10 }
   0xd   :  { %p642_p6 = por %p641_p5, %p640_p4 }
   0xf   :  { %p643_p7 = pnand %p642_p6, %p636_p3 }
  0x11   :  { %646 = shalt.err (!%p643_p7)
}
  0x12   :  { %s744_s11 = smov 128   ;;  %s745_s12 = smov 8  }
  0x13   :  { %37 = dma.hbm_to_vmem [thread:$0]  %s902_s1, 2048, %s32_s25, [#allocation6], %s744_s11, %s744_s11, %s745_s12  }
  0x14   :  { %s746_s15 = smov [#allocation2]   ;;  %s747_s17 = smov [#allocation7]  }
  0x15   :  { %s22_s16 = sshll.u32 %s746_s15, 4  ;;  %s45_s18 = sshll.u32 %s747_s17, 4  ;;  %s23_s16 = int_to_ptr.vmem [resolvable:$true] %s22_s16  ;;  %s46_s18 = int_to_ptr.vmem [resolvable:$true] %s45_s18 }
  0x16   :  { %s647_s21 = scalar_lea.hbm %s901_s0, 128 }
  0x17   :  { %p648_p8 = scmp.ne.s32.totalorder %s901_s0, %s647_s21  ;;  %p651_p9 = scmp.lt.u32.totalorder %s647_s21, %s901_s0 }
  0x19   :  { %p653_p10 = pnand %p651_p9, %p648_p8 }
  0x1b   :  { %656 = shalt.err (!%p653_p10)
}
  0x1c   :  { %s657_s1 = scalar_lea.vmem %s23_s16, 128  ;;  %p662_p12 = scmp.lt.s32.totalorder %s23_s16, %s23_s16 }
  0x1d   :  { %p658_p11 = scmp.ne.s32.totalorder %s23_s16, %s657_s1  ;;  %p663_p13 = scmp.lt.s32.totalorder %s657_s1, %s657_s1 }
  0x1f   :  { %p664_p0 = por %p663_p13, %p662_p12 }
  0x21   :  { %p665_p1 = pnand %p664_p0, %p658_p11 }
  0x23   :  { %668 = shalt.err (!%p665_p1)
}
  0x24   :  { %25 = dma.hbm_to_vmem [thread:$0]  %s901_s0, 128, %s23_s16, [#allocation3]  }
  0x25   :  { %s669_s30 = scalar_lea.hbm %s904_s3, 2048 }
  0x26   :  { %p670_p2 = scmp.ne.s32.totalorder %s904_s3, %s669_s30  ;;  %p673_p3 = scmp.lt.u32.totalorder %s669_s30, %s904_s3 }
  0x28   :  { %p675_p4 = pnand %p673_p3, %p670_p2 }
  0x2a   :  { %678 = shalt.err (!%p675_p4)
}
  0x2b   :  { %s679_s14 = scalar_lea.vmem %s46_s18, 2048  ;;  %p684_p6 = scmp.lt.s32.totalorder %s46_s18, %s46_s18 }
  0x2c   :  { %p680_p5 = scmp.ne.s32.totalorder %s46_s18, %s679_s14  ;;  %p685_p7 = scmp.lt.s32.totalorder %s679_s14, %s679_s14 }
  0x2e   :  { %p686_p8 = por %p685_p7, %p684_p6 }
  0x30   :  { %p687_p9 = pnand %p686_p8, %p680_p5 }
  0x32   :  { %690 = shalt.err (!%p687_p9)
}
  0x33   :  { %51 = dma.hbm_to_vmem [thread:$0]  %s904_s3, 2048, %s46_s18, [#allocation6], %s744_s11, %s744_s11, %s745_s12  }
  0x34   :  { %s748_s16 = smov [#allocation8]   ;;  %s691_s21 = scalar_lea.hbm %s906_s5, 2048 }
  0x35   :  { %s59_s17 = sshll.u32 %s748_s16, 4  ;;  %p692_p10 = scmp.ne.s32.totalorder %s906_s5, %s691_s21  ;;  %s60_s17 = int_to_ptr.vmem [resolvable:$true] %s59_s17 }
  0x36   :  { %p695_p11 = scmp.lt.u32.totalorder %s691_s21, %s906_s5 }
  0x38   :  { %p697_p12 = pnand %p695_p11, %p692_p10 }
  0x3a   :  { %700 = shalt.err (!%p697_p12)
}
  0x3b   :  { %s701_s1 = scalar_lea.vmem %s60_s17, 2048  ;;  %p706_p0 = scmp.lt.s32.totalorder %s60_s17, %s60_s17 }
  0x3c   :  { %p702_p13 = scmp.ne.s32.totalorder %s60_s17, %s701_s1  ;;  %p707_p1 = scmp.lt.s32.totalorder %s701_s1, %s701_s1 }
  0x3e   :  { %p708_p2 = por %p707_p1, %p706_p0 }
  0x40   :  { %p709_p3 = pnand %p708_p2, %p702_p13 }
  0x42   :  { %712 = shalt.err (!%p709_p3)
}
  0x43   :  { %65 = dma.hbm_to_vmem [thread:$0]  %s906_s5, 2048, %s60_s17, [#allocation9], %s744_s11, %s744_s11, %s745_s12  }
  0x44   :  { %735 = dma.done.wait [#allocation3], 128  }
  0x45   :  { %736 = vsyncadd [#allocation3], 4294967168 }
  0x46   :  { %737 = dma.done.wait [#allocation6], 4096  }
  0x47   :  { %738 = vsyncadd [#allocation6], 4294963200 }
  0x48   :  { %739 = dma.done.wait [#allocation9], 2048  }
  0x49   :  { %740 = vsyncadd [#allocation9], 4294965248  ;;  %v749_v0 = vmov 0.0|0.0   ;;  %vm750_vm0 = vmmov 0   ;;  %v751_v1 = vmov 0.0   ;;  %v81_v2 = vld [vmem:[#allocation5] sm:$0xff] }
  0x4a   :  { %543 = vmatprep.subr.bf16.mxu0 %v749_v0  ;;  %470 = vmatprep.mubr.msk.f32.mxu0 %vm750_vm0, %v751_v1  ;;  %v82_v3 = vld [vmem:[#allocation5 + $0x8] sm:$0xff]  ;;  %v83_v4 = vld [vmem:[#allocation5 + $0x10] sm:$0xff]  ;;  %v84_v6 = vld [vmem:[#allocation5 + $0x18] sm:$0xff]  ;;  %s752_s28 = smov [#allocation10]  }
  0x4b   :  { %567 = vmatprep.subr.bf16.mxu1 %v749_v0  ;;  %505 = vmatprep.mubr.msk.f32.mxu1 %vm750_vm0, %v751_v1  ;;  %v544_v5 = vpack.c.bf16 %v82_v3, %v81_v2  ;;  %v547_v7 = vpack.c.bf16 %v84_v6, %v83_v4  ;;  %v85_v8 = vld [vmem:[#allocation5 + $0x20] sm:$0xff]  ;;  %v86_v9 = vld [vmem:[#allocation5 + $0x28] sm:$0xff]  ;;  %v179_v12 = vld [vmem:[#allocation7 + $0x10] sm:$0xff]  ;;  %s373_s29 = sshll.u32 %s752_s28, 4  ;;  %s374_s29 = int_to_ptr.vmem [resolvable:$true] %s373_s29 }
  0x4c   :  { %v177_v10 = vld [vmem:[#allocation7] sm:$0xff]  ;;  %v178_v11 = vld [vmem:[#allocation7 + $0x8] sm:$0xff]  ;;  %v180_v13 = vld [vmem:[#allocation7 + $0x18] sm:$0xff]  ;;  %v550_v14 = vpack.c.bf16 %v86_v9, %v85_v8  ;;  %s713_s30 = scalar_lea.vmem %s374_s29, 128  ;;  %p718_p5 = scmp.lt.s32.totalorder %s374_s29, %s374_s29 }
  0x4d   :  { %545 = vmatpush3.bf16.msra.mxu0 %v544_v5  ;;  %v568_v15 = vpack.c.bf16 %v178_v11, %v177_v10  ;;  %v87_v16 = vld [vmem:[#allocation5 + $0x30] sm:$0xff]  ;;  %v88_v17 = vld [vmem:[#allocation5 + $0x38] sm:$0xff]  ;;  %v571_v18 = vpack.c.bf16 %v180_v13, %v179_v12  ;;  %v181_v19 = vld [vmem:[#allocation7 + $0x20] sm:$0xff]  ;;  %p714_p4 = scmp.ne.s32.totalorder %s374_s29, %s713_s30  ;;  %p719_p6 = scmp.lt.s32.totalorder %s713_s30, %s713_s30 }
  0x4e   :  { %546 = vmatprep.subr.bf16.mxu0 %v749_v0  ;;  %v182_v20 = vld [vmem:[#allocation7 + $0x28] sm:$0xff]  ;;  %v553_v21 = vpack.c.bf16 %v88_v17, %v87_v16  ;;  %v89_v22 = vld [vmem:[#allocation5 + $0x40] sm:$0xff]  ;;  %v183_v25 = vld [vmem:[#allocation7 + $0x30] sm:$0xff] }
  0x4f   :  { %569 = vmatpush3.bf16.msra.mxu1 %v568_v15  ;;  %v90_v23 = vld [vmem:[#allocation5 + $0x48] sm:$0xff]  ;;  %v574_v24 = vpack.c.bf16 %v182_v20, %v181_v19  ;;  %v184_v26 = vld [vmem:[#allocation7 + $0x38] sm:$0xff]  ;;  %v91_v28 = vld [vmem:[#allocation5 + $0x50] sm:$0xff]  ;;  %p720_p7 = por %p719_p6, %p718_p5 }
  0x50   :  { %570 = vmatprep.subr.bf16.mxu1 %v749_v0  ;;  %v556_v27 = vpack.c.bf16 %v90_v23, %v89_v22  ;;  %v92_v29 = vld [vmem:[#allocation5 + $0x58] sm:$0xff]  ;;  %v577_v30 = vpack.c.bf16 %v184_v26, %v183_v25  ;;  %v185_v31 = vld [vmem:[#allocation7 + $0x40] sm:$0xff]  ;;  %v186_v32 = vld [vmem:[#allocation7 + $0x48] sm:$0xff] }
  0x51   :  { %548 = vmatpush3.bf16.msra.mxu0 %v547_v7  ;;  %v559_v33 = vpack.c.bf16 %v92_v29, %v91_v28  ;;  %v93_v34 = vld [vmem:[#allocation5 + $0x60] sm:$0xff]  ;;  %v94_v35 = vld [vmem:[#allocation5 + $0x68] sm:$0xff]  ;;  %v580_v36 = vpack.c.bf16 %v186_v32, %v185_v31  ;;  %v187_v37 = vld [vmem:[#allocation7 + $0x50] sm:$0xff]  ;;  %p721_p8 = pnand %p720_p7, %p714_p4 }
  0x52   :  { %549 = vmatprep.subr.bf16.mxu0 %v749_v0  ;;  %v188_v38 = vld [vmem:[#allocation7 + $0x58] sm:$0xff]  ;;  %v562_v39 = vpack.c.bf16 %v94_v35, %v93_v34  ;;  %v95_v40 = vld [vmem:[#allocation5 + $0x70] sm:$0xff]  ;;  %v189_v43 = vld [vmem:[#allocation7 + $0x60] sm:$0xff] }
  0x53   :  { %572 = vmatpush3.bf16.msra.mxu1 %v571_v18  ;;  %v96_v41 = vld [vmem:[#allocation5 + $0x78] sm:$0xff]  ;;  %v583_v42 = vpack.c.bf16 %v188_v38, %v187_v37  ;;  %v190_v44 = vld [vmem:[#allocation7 + $0x68] sm:$0xff]  ;;  %v191_v48 = vld [vmem:[#allocation7 + $0x70] sm:$0xff] }
  0x54   :  { %573 = vmatprep.subr.bf16.mxu1 %v749_v0  ;;  %v565_v45 = vpack.c.bf16 %v96_v41, %v95_v40  ;;  %v586_v46 = vpack.c.bf16 %v190_v44, %v189_v43  ;;  %v80_v47 = vld [vmem:[#allocation2] sm:$0xff]  ;;  %v273_v51 = vld [vmem:[#allocation8] sm:$0xff]  ;;  %v274_v52 = vld [vmem:[#allocation8 + $0x8] sm:$0xff] }
  0x55   :  { %551 = vmatpush3.bf16.msra.mxu0 %v550_v14  ;;  %v192_v49 = vld [vmem:[#allocation7 + $0x78] sm:$0xff]  ;;  %v275_v53 = vld [vmem:[#allocation8 + $0x10] sm:$0xff]  ;;  %v592_v54 = vpack.c.bf16 %v274_v52, %v273_v51  ;;  %v277_v57 = vld [vmem:[#allocation8 + $0x20] sm:$0xff] }
  0x56   :  { %552 = vmatprep.subr.bf16.mxu0 %v749_v0  ;;  %v589_v50 = vpack.c.bf16 %v192_v49, %v191_v48  ;;  %v276_v55 = vld [vmem:[#allocation8 + $0x18] sm:$0xff]  ;;  %v278_v58 = vld [vmem:[#allocation8 + $0x28] sm:$0xff]  ;;  %v279_v60 = vld [vmem:[#allocation8 + $0x30] sm:$0xff] }
  0x57   :  { %575 = vmatpush3.bf16.msra.mxu1 %v574_v24  ;;  %v595_v56 = vpack.c.bf16 %v276_v55, %v275_v53  ;;  %v598_v59 = vpack.c.bf16 %v278_v58, %v277_v57  ;;  %v280_v61 = vld [vmem:[#allocation8 + $0x38] sm:$0xff]  ;;  %v281_v63 = vld [vmem:[#allocation8 + $0x40] sm:$0xff]  ;;  %v283_v3 = vld [vmem:[#allocation8 + $0x50] sm:$0xff] }
  0x58   :  { %576 = vmatprep.subr.bf16.mxu1 %v749_v0  ;;  %v601_v62 = vpack.c.bf16 %v280_v61, %v279_v60  ;;  %v284_v4 = vld [vmem:[#allocation8 + $0x58] sm:$0xff]  ;;  %v285_v6 = vld [vmem:[#allocation8 + $0x60] sm:$0xff]  ;;  %v286_v7 = vld [vmem:[#allocation8 + $0x68] sm:$0xff] }
  0x59   :  { %554 = vmatpush3.bf16.msra.mxu0 %v553_v21  ;;  %v607_v5 = vpack.c.bf16 %v284_v4, %v283_v3  ;;  %v610_v8 = vpack.c.bf16 %v286_v7, %v285_v6  ;;  %v384_v9 = vld [vmem:[%s903_s2] ss:$0 sm:$0xff]  ;;  %v287_v15 = vld [vmem:[#allocation8 + $0x70] sm:$0xff] }
  0x5a   :  { %555 = vmatprep.subr.bf16.mxu0 %v749_v0  ;;  %v288_v16 = vld [vmem:[#allocation8 + $0x78] sm:$0xff] }
  0x5b   :  { %578 = vmatpush3.bf16.msra.mxu1 %v577_v30  ;;  %v613_v17 = vpack.c.bf16 %v288_v16, %v287_v15  ;;  %v385_v18 = vld [vmem:[%s905_s4] ss:$0 sm:$0xff] }
  0x5c   :  { %579 = vmatprep.subr.bf16.mxu1 %v749_v0  ;;  %v386_v23 = vld [vmem:[%s907_s6] ss:$0 sm:$0xff] }
  0x5d   :  { %557 = vmatpush3.bf16.msra.mxu0 %v556_v27 }
  0x5e   :  { %558 = vmatprep.subr.bf16.mxu0 %v749_v0 }
  0x5f   :  { %581 = vmatpush3.bf16.msra.mxu1 %v580_v36 }
  0x60   :  { %582 = vmatprep.subr.bf16.mxu1 %v749_v0 }
  0x61   :  { %560 = vmatpush3.bf16.msra.mxu0 %v559_v33 }
  0x62   :  { %561 = vmatprep.subr.bf16.mxu0 %v749_v0 }
  0x63   :  { %584 = vmatpush3.bf16.msra.mxu1 %v583_v42 }
  0x64   :  { %585 = vmatprep.subr.bf16.mxu1 %v749_v0 }
  0x65   :  { %563 = vmatpush3.bf16.msra.mxu0 %v562_v39 }
  0x66   :  { %564 = vmatprep.subr.bf16.mxu0 %v749_v0 }
  0x67   :  { %587 = vmatpush3.bf16.msra.mxu1 %v586_v46 }
  0x68   :  { %588 = vmatprep.subr.bf16.mxu1 %v749_v0 }
  0x69   :  { %566 = vmatpush3.bf16.msra.mxu0 %v565_v45 }
  0x6a   :  { %591 = vmatprep.subr.bf16.mxu0 %v749_v0 }
  0x6b   :  { %590 = vmatpush3.bf16.msra.mxu1 %v589_v50 }
  0x6c   :  { %471 = vmatmul.mubr.f32.vlgmr.msra.gmra.mrb[0].mxu0 %v80_v47 }
  0x6d   :  { %540 = vmatprep.mubr.msk.f32.mxu0 %vm750_vm0, %v751_v1  ;;  %593 = vmatpush3.bf16.msra.mxu0 %v592_v54  ;;  %v282_v1 = vld [vmem:[#allocation8 + $0x48] sm:$0xff] }
  0x6e   :  { %594 = vmatprep.subr.bf16.mxu0 %v749_v0  ;;  %v604_v2 = vpack.c.bf16 %v282_v1, %v281_v63 }
  0x71   :  { %596 = vmatpush3.bf16.msra.mxu0 %v595_v56 }
  0x72   :  { %597 = vmatprep.subr.bf16.mxu0 %v749_v0 }
  0x75   :  { %599 = vmatpush3.bf16.msra.mxu0 %v598_v59 }
  0x76   :  { %600 = vmatprep.subr.bf16.mxu0 %v749_v0 }
  0x79   :  { %602 = vmatpush3.bf16.msra.mxu0 %v601_v62 }
  0x7a   :  { %603 = vmatprep.subr.bf16.mxu0 %v749_v0 }
  0x7d   :  { %605 = vmatpush3.bf16.msra.mxu0 %v604_v2 }
  0x7e   :  { %606 = vmatprep.subr.bf16.mxu0 %v749_v0 }
  0x81   :  { %608 = vmatpush3.bf16.msra.mxu0 %v607_v5 }
  0x82   :  { %609 = vmatprep.subr.bf16.mxu0 %v749_v0 }
  0x85   :  { %611 = vmatpush3.bf16.msra.mxu0 %v610_v8 }
  0x86   :  { %612 = vmatprep.subr.bf16.mxu0 %v749_v0 }
  0x89   :  { %614 = vmatpush3.bf16.msra.mxu0 %v613_v17 }
 0x13f   :  { %v170_v10 = vpop.f32.mrb[0].mxu0 }
 0x140   :  { %v171_v11 = vadd.f32 %v384_v9, %v170_v10  ;;  %v472_v12 = vpop.f32.mrb[1].mxu0 }
 0x142   :  { %v175_v13 = vmul.f32 0.1, %v171_v11  ;;  %vm174_vm1 = vcmp.ge.f32.partialorder %v171_v11, 0.0 }
 0x144   :  { %v176_v14 = vsel %vm174_vm1, %v171_v11, %v175_v13 }
 0x145   :  { %506 = vmatmul.mubr.f32.vlgmr.msra.gmra.mrb[0].mxu1 %v176_v14 }
 0x218   :  { %v266_v0 = vpop.f32.mrb[0].mxu1 }
 0x219   :  { %v267_v19 = vadd.f32 %v385_v18, %v266_v0  ;;  %v507_v20 = vpop.f32.mrb[1].mxu1 }
 0x21b   :  { %vm270_vm2 = vcmp.ge.f32.partialorder %v267_v19, 0.0  ;;  %v271_v21 = vmul.f32 0.1, %v267_v19 }
 0x21d   :  { %v272_v22 = vsel %vm270_vm2, %v267_v19, %v271_v21 }
 0x21e   :  { %541 = vmatmul.mubr.f32.vlgmr.msra.gmra.mrb[2].mxu0 %v272_v22 }
 0x2f1   :  { %v362_v24 = vpop.f32.mrb[2].mxu0 }
 0x2f2   :  { %v363_v25 = vadd.f32 %v386_v23, %v362_v24  ;;  %v542_v26 = vpop.f32.mrb[3].mxu0 }
 0x2f4   :  { %366 = vst [vmem:[#allocation10] sm:$0xff] %v363_v25 }
 0x2f5   :  { %724 = shalt.err (!%p721_p8)
}
 0x2f6   :  { %s725_s9 = scalar_lea.hbm %s908_s7, 128 }
 0x2f7   :  { %p726_p9 = scmp.ne.s32.totalorder %s908_s7, %s725_s9  ;;  %p729_p10 = scmp.lt.u32.totalorder %s725_s9, %s908_s7 }
 0x2f9   :  { %p731_p11 = pnand %p729_p10, %p726_p9 }
 0x2fb   :  { %734 = shalt.err (!%p731_p11)
}
 0x2fc   :  { %376 = dma.vmem_to_hbm [thread:$0]  %s374_s29, 128, %s908_s7, [#allocation4]  }
 0x2fd   :  { %741 = dma.done.wait [#allocation4], 128  }
 0x2fe   :  { %742 = vsyncadd [#allocation4], 4294967168 }
 0x2ff   :  { %380 = vsyncpa [#allocation3], 1 }
 0x300   :  { %381 = vsyncpa [#allocation6], 1 }
 0x301   :  { %382 = vsyncpa [#allocation9], 1 }
 0x302   :  { %383 = vsyncpa [#allocation4], 1 }

</bundles_post_ra>
